<compile_context>
chip_gen: v7x
topology: tpu7x:2x2x1
jax: 0.10.0
libtpu: 0.0.40
codegen_flags: <defaults>
</compile_context>

<pallas_src>
import jax
import jax.numpy as jnp
from jax.experimental import pallas as pl
from jax.experimental.pallas import tpu as pltpu

# ---- module hyper-parameters (from the reference script) --------------------
PADDING = 6
K = 2 * PADDING + 1            # 13 : conv kernel size
F = 16                         # nombre_filtre
C = 4                          # `channel` global in the reference; small value chosen
N, H, W = 2, 16, 16            # small example shapes
HP = H + 2 * PADDING           # 28 : padded height seen by the kernel
KC = K * C                     # 52 : per-vertical-tap contraction width (k_w * C)
HW = H * W                     # 256: flattened spatial rows per image


# ---- fused Pallas kernel -----------------------------------------------------
def net1_fused_kernel(xw_ref, w_ref, a_ref, o_ref):
    """One image per grid step.

    xw_ref: (HP*W, KC) bf16  horizontal im2col of the zero-padded image,
                             row q = ip*W + j, col = kw*C + c
    w_ref : (K, KC, 2F) bf16 fused [real | imag] weights, one (KC, 2F) per k_h tap
    a_ref : (HW, HW)   bf16  5x5 avg-pool (count_include_pad) as a 0/1 band matrix
    o_ref : (HW, F)    f32   pooled magnitude, row p = i*W + j
    """
    # --- conv: 13 vertical taps, each a sublane-aligned row-shifted matmul ---
    # rows (i + kh, j) for all outputs (i, j) are contiguous at offset kh*W
    # (multiple of 16 -> sublane-aligned static slice, no lane shuffles).
    acc = jnp.dot(xw_ref[0:HW, :], w_ref[0],
                  preferred_element_type=jnp.float32)            # (HW, 2F) f32
    for kh in range(1, K):
        xk = xw_ref[kh * W: kh * W + HW, :]                      # (HW, KC) bf16
        acc = acc + jnp.dot(xk, w_ref[kh],
                            preferred_element_type=jnp.float32)  # (HW, 2F) f32

    # --- complex magnitude ---
    yr = acc[:, :F]
    yi = acc[:, F:]
    mag = jnp.sqrt(yr * yr + yi * yi)                            # (HW, F) f32

    # --- 5x5 avg pool (stride 1, pad 2, count_include_pad=True) as one matmul ---
    pooled = jnp.dot(a_ref[...], mag.astype(jnp.bfloat16),
                     preferred_element_type=jnp.float32)         # (HW, F) f32
    o_ref[...] = pooled * (1.0 / 25.0)


# ---- wrapper -----------------------------------------------------------------
def net1_forward(x_nchw, w_real, w_imag):
    n, c, h, w = x_nchw.shape
    assert (c, h, w) == (C, H, W), (c, h, w)

    # NCHW -> NHWC, zero-pad spatial by the conv padding.
    xp = jnp.pad(jnp.transpose(x_nchw, (0, 2, 3, 1)),
                 ((0, 0), (PADDING, PADDING), (PADDING, PADDING), (0, 0)))
    # Horizontal (k_w) im2col only: xw[n, ip, j, kw*C + c] = xp[n, ip, j + kw, c].
    xw = jnp.concatenate([xp[:, :, kw:kw + W, :] for kw in range(K)], axis=-1)
    xw = xw.reshape(n, HP * W, KC).astype(jnp.bfloat16)          # (N, 448, 52)

    # Fused conv weights: per k_h tap a (K*C, 2F) matrix, cols = [real | imag].
    wr = jnp.transpose(w_real, (2, 3, 1, 0)).reshape(K, KC, F)   # [kh, kw*C+c, f]
    wi = jnp.transpose(w_imag, (2, 3, 1, 0)).reshape(K, KC, F)
    wf = jnp.concatenate([wr, wi], axis=-1).astype(jnp.bfloat16)  # (K, KC, 2F)

    # Constant 0/1 pooling band matrix over flattened rows p = i*W + j
    # (XLA constant-folds this; scaled by 1/25 inside the kernel so the 0/1
    #  entries are exact in bf16).
    r = jnp.arange(HW)
    di = r[:, None] // W - r[None, :] // W
    dj = r[:, None] % W - r[None, :] % W
    a_pool = ((jnp.abs(di) <= 2) & (jnp.abs(dj) <= 2)).astype(jnp.bfloat16)  # (HW, HW)

    out = pl.pallas_call(
        net1_fused_kernel,
        out_shape=jax.ShapeDtypeStruct((n, HW, F), jnp.float32),
        grid=(n,),
        in_specs=[
            pl.BlockSpec((None, HP * W, KC), lambda b: (b, 0, 0)),
            pl.BlockSpec((K, KC, 2 * F), lambda b: (0, 0, 0)),   # stays VMEM-resident
            pl.BlockSpec((HW, HW), lambda b: (0, 0)),            # stays VMEM-resident
        ],
        out_specs=pl.BlockSpec((None, HW, F), lambda b: (b, 0, 0)),
        compiler_params=pltpu.CompilerParams(
            dimension_semantics=("parallel",),   # batch axis -> both TCs on v7x
        ),
    )(xw, wf, a_pool)

    # (N, H*W, F) -> (N, F, H, W) (PyTorch NCHW)
    return jnp.transpose(out.reshape(n, H, W, F), (0, 3, 1, 2))


# ---- pure-JAX reference (for a one-shot numerical check) ----------------------
def net1_reference(x_nchw, w_real, w_imag):
    dn = jax.lax.conv_dimension_numbers(x_nchw.shape, w_real.shape,
                                        ("NCHW", "OIHW", "NCHW"))

    def conv(wgt):
        return jax.lax.conv_general_dilated(
            x_nchw, wgt, window_strides=(1, 1),
            padding=[(PADDING, PADDING), (PADDING, PADDING)],
            dimension_numbers=dn, precision=jax.lax.Precision.HIGHEST)

    mag = jnp.sqrt(conv(w_real) ** 2 + conv(w_imag) ** 2)
    summed = jax.lax.reduce_window(
        mag, 0.0, jax.lax.add, (1, 1, 5, 5), (1, 1, 1, 1),
        [(0, 0), (0, 0), (2, 2), (2, 2)])
    return summed / 25.0


# ---- parameter init (deterministic, PyTorch-like uniform) --------------------
def init_params(key):
    fan_in = C * K * K
    bound = 1.0 / jnp.sqrt(fan_in)
    k1, k2 = jax.random.split(key)
    w_real = jax.random.uniform(k1, (F, C, K, K), jnp.float32, -bound, bound)
    w_imag = jax.random.uniform(k2, (F, C, K, K), jnp.float32, -bound, bound)
    return w_real, w_imag


if __name__ == "__main__":
    key = jax.random.PRNGKey(0)
    k_x, k_w = jax.random.split(key)
    x = jax.random.normal(k_x, (N, C, H, W), jnp.float32)        # NCHW, like PyTorch
    w_real, w_imag = init_params(k_w)

    y = jax.jit(net1_forward)(x, w_real, w_imag)
    y = jax.block_until_ready(y)
    assert y.shape == (N, F, H, W), y.shape

    # numerical check against an f32 XLA reference (kernel runs the conv in bf16)
    y_ref = net1_reference(x, w_real, w_imag)
    max_err = float(jnp.max(jnp.abs(y - y_ref)))
    assert jnp.allclose(y, y_ref, rtol=3e-2, atol=3e-2), max_err

    # TODO(synk): self.bn (BatchNorm2d) is declared but never used in forward(); omitted.
    print("KERNEL_OK")
</pallas_src>

<mosaic_0001>
module attributes {stable_mosaic.version = 11 : i64} {
  func.func @net1_fused_kernel(%arg0: i32, %arg1: memref<1x448x52xbf16, #tpu.memory_space<vmem>>, %arg2: memref<13x52x32xbf16, #tpu.memory_space<vmem>>, %arg3: memref<256x256xbf16, #tpu.memory_space<vmem>>, %arg4: memref<1x256x16xf32, #tpu.memory_space<vmem>>) attributes {dimension_semantics = [#tpu.dimension_semantics<parallel>], iteration_bounds = array<i64: 2>, scalar_prefetch = 0 : i64, scratch_operands = 0 : i64, tpu.core_type = #tpu.core_type<tc>, window_params = [{transform_indices = @transform_0, window_bounds = array<i64: 1, 448, 52>}, {pipeline_mode = #tpu.pipeline_mode<synchronous>, transform_indices = @transform_1, window_bounds = array<i64: 13, 52, 32>}, {pipeline_mode = #tpu.pipeline_mode<synchronous>, transform_indices = @transform_2, window_bounds = array<i64: 256, 256>}, {transform_indices = @transform_3, window_bounds = array<i64: 1, 256, 16>}]} {
    %c0 = arith.constant 0 : index
    %c0_0 = arith.constant 0 : index
    %c0_1 = arith.constant 0 : index
    %0 = vector.load %arg1[%c0, %c0_0, %c0_1] : memref<1x448x52xbf16, #tpu.memory_space<vmem>>, vector<1x256x52xbf16>
    %1 = vector.shape_cast %0 : vector<1x256x52xbf16> to vector<256x52xbf16>
    %c0_2 = arith.constant 0 : index
    %c0_3 = arith.constant 0 : index
    %c0_4 = arith.constant 0 : index
    %2 = vector.load %arg2[%c0_2, %c0_3, %c0_4] : memref<13x52x32xbf16, #tpu.memory_space<vmem>>, vector<1x52x32xbf16>
    %3 = vector.shape_cast %2 : vector<1x52x32xbf16> to vector<52x32xbf16>
    %cst = arith.constant dense<0.000000e+00> : vector<256x32xf32>
    %4 = tpu.matmul %1, %3, %cst {dimension_numbers = #tpu.dot_dimension_numbers<[1], [0], [0], [1], [0, 0, 1, 1], [], []>} : vector<256x52xbf16>, vector<52x32xbf16>, vector<256x32xf32> -> vector<256x32xf32>
    %c0_5 = arith.constant 0 : index
    %c16 = arith.constant 16 : index
    %c0_6 = arith.constant 0 : index
    %5 = vector.load %arg1[%c0_5, %c16, %c0_6] : memref<1x448x52xbf16, #tpu.memory_space<vmem>>, vector<1x256x52xbf16>
    %6 = vector.shape_cast %5 : vector<1x256x52xbf16> to vector<256x52xbf16>
    %c1 = arith.constant 1 : index
    %c0_7 = arith.constant 0 : index
    %c0_8 = arith.constant 0 : index
    %7 = vector.load %arg2[%c1, %c0_7, %c0_8] : memref<13x52x32xbf16, #tpu.memory_space<vmem>>, vector<1x52x32xbf16>
    %8 = vector.shape_cast %7 : vector<1x52x32xbf16> to vector<52x32xbf16>
    %cst_9 = arith.constant dense<0.000000e+00> : vector<256x32xf32>
    %9 = tpu.matmul %6, %8, %cst_9 {dimension_numbers = #tpu.dot_dimension_numbers<[1], [0], [0], [1], [0, 0, 1, 1], [], []>} : vector<256x52xbf16>, vector<52x32xbf16>, vector<256x32xf32> -> vector<256x32xf32>
    %10 = arith.addf %4, %9 : vector<256x32xf32>
    %c0_10 = arith.constant 0 : index
    %c32 = arith.constant 32 : index
    %c0_11 = arith.constant 0 : index
    %11 = vector.load %arg1[%c0_10, %c32, %c0_11] : memref<1x448x52xbf16, #tpu.memory_space<vmem>>, vector<1x256x52xbf16>
    %12 = vector.shape_cast %11 : vector<1x256x52xbf16> to vector<256x52xbf16>
    %c2 = arith.constant 2 : index
    %c0_12 = arith.constant 0 : index
    %c0_13 = arith.constant 0 : index
    %13 = vector.load %arg2[%c2, %c0_12, %c0_13] : memref<13x52x32xbf16, #tpu.memory_space<vmem>>, vector<1x52x32xbf16>
    %14 = vector.shape_cast %13 : vector<1x52x32xbf16> to vector<52x32xbf16>
    %cst_14 = arith.constant dense<0.000000e+00> : vector<256x32xf32>
    %15 = tpu.matmul %12, %14, %cst_14 {dimension_numbers = #tpu.dot_dimension_numbers<[1], [0], [0], [1], [0, 0, 1, 1], [], []>} : vector<256x52xbf16>, vector<52x32xbf16>, vector<256x32xf32> -> vector<256x32xf32>
    %16 = arith.addf %10, %15 : vector<256x32xf32>
    %c0_15 = arith.constant 0 : index
    %c48 = arith.constant 48 : index
    %c0_16 = arith.constant 0 : index
    %17 = vector.load %arg1[%c0_15, %c48, %c0_16] : memref<1x448x52xbf16, #tpu.memory_space<vmem>>, vector<1x256x52xbf16>
    %18 = vector.shape_cast %17 : vector<1x256x52xbf16> to vector<256x52xbf16>
    %c3 = arith.constant 3 : index
    %c0_17 = arith.constant 0 : index
    %c0_18 = arith.constant 0 : index
    %19 = vector.load %arg2[%c3, %c0_17, %c0_18] : memref<13x52x32xbf16, #tpu.memory_space<vmem>>, vector<1x52x32xbf16>
    %20 = vector.shape_cast %19 : vector<1x52x32xbf16> to vector<52x32xbf16>
    %cst_19 = arith.constant dense<0.000000e+00> : vector<256x32xf32>
    %21 = tpu.matmul %18, %20, %cst_19 {dimension_numbers = #tpu.dot_dimension_numbers<[1], [0], [0], [1], [0, 0, 1, 1], [], []>} : vector<256x52xbf16>, vector<52x32xbf16>, vector<256x32xf32> -> vector<256x32xf32>
    %22 = arith.addf %16, %21 : vector<256x32xf32>
    %c0_20 = arith.constant 0 : index
    %c64 = arith.constant 64 : index
    %c0_21 = arith.constant 0 : index
    %23 = vector.load %arg1[%c0_20, %c64, %c0_21] : memref<1x448x52xbf16, #tpu.memory_space<vmem>>, vector<1x256x52xbf16>
    %24 = vector.shape_cast %23 : vector<1x256x52xbf16> to vector<256x52xbf16>
    %c4 = arith.constant 4 : index
    %c0_22 = arith.constant 0 : index
    %c0_23 = arith.constant 0 : index
    %25 = vector.load %arg2[%c4, %c0_22, %c0_23] : memref<13x52x32xbf16, #tpu.memory_space<vmem>>, vector<1x52x32xbf16>
    %26 = vector.shape_cast %25 : vector<1x52x32xbf16> to vector<52x32xbf16>
    %cst_24 = arith.constant dense<0.000000e+00> : vector<256x32xf32>
    %27 = tpu.matmul %24, %26, %cst_24 {dimension_numbers = #tpu.dot_dimension_numbers<[1], [0], [0], [1], [0, 0, 1, 1], [], []>} : vector<256x52xbf16>, vector<52x32xbf16>, vector<256x32xf32> -> vector<256x32xf32>
    %28 = arith.addf %22, %27 : vector<256x32xf32>
    %c0_25 = arith.constant 0 : index
    %c80 = arith.constant 80 : index
    %c0_26 = arith.constant 0 : index
    %29 = vector.load %arg1[%c0_25, %c80, %c0_26] : memref<1x448x52xbf16, #tpu.memory_space<vmem>>, vector<1x256x52xbf16>
    %30 = vector.shape_cast %29 : vector<1x256x52xbf16> to vector<256x52xbf16>
    %c5 = arith.constant 5 : index
    %c0_27 = arith.constant 0 : index
    %c0_28 = arith.constant 0 : index
    %31 = vector.load %arg2[%c5, %c0_27, %c0_28] : memref<13x52x32xbf16, #tpu.memory_space<vmem>>, vector<1x52x32xbf16>
    %32 = vector.shape_cast %31 : vector<1x52x32xbf16> to vector<52x32xbf16>
    %cst_29 = arith.constant dense<0.000000e+00> : vector<256x32xf32>
    %33 = tpu.matmul %30, %32, %cst_29 {dimension_numbers = #tpu.dot_dimension_numbers<[1], [0], [0], [1], [0, 0, 1, 1], [], []>} : vector<256x52xbf16>, vector<52x32xbf16>, vector<256x32xf32> -> vector<256x32xf32>
    %34 = arith.addf %28, %33 : vector<256x32xf32>
    %c0_30 = arith.constant 0 : index
    %c96 = arith.constant 96 : index
    %c0_31 = arith.constant 0 : index
    %35 = vector.load %arg1[%c0_30, %c96, %c0_31] : memref<1x448x52xbf16, #tpu.memory_space<vmem>>, vector<1x256x52xbf16>
    %36 = vector.shape_cast %35 : vector<1x256x52xbf16> to vector<256x52xbf16>
    %c6 = arith.constant 6 : index
    %c0_32 = arith.constant 0 : index
    %c0_33 = arith.constant 0 : index
    %37 = vector.load %arg2[%c6, %c0_32, %c0_33] : memref<13x52x32xbf16, #tpu.memory_space<vmem>>, vector<1x52x32xbf16>
    %38 = vector.shape_cast %37 : vector<1x52x32xbf16> to vector<52x32xbf16>
    %cst_34 = arith.constant dense<0.000000e+00> : vector<256x32xf32>
    %39 = tpu.matmul %36, %38, %cst_34 {dimension_numbers = #tpu.dot_dimension_numbers<[1], [0], [0], [1], [0, 0, 1, 1], [], []>} : vector<256x52xbf16>, vector<52x32xbf16>, vector<256x32xf32> -> vector<256x32xf32>
    %40 = arith.addf %34, %39 : vector<256x32xf32>
    %c0_35 = arith.constant 0 : index
    %c112 = arith.constant 112 : index
    %c0_36 = arith.constant 0 : index
    %41 = vector.load %arg1[%c0_35, %c112, %c0_36] : memref<1x448x52xbf16, #tpu.memory_space<vmem>>, vector<1x256x52xbf16>
    %42 = vector.shape_cast %41 : vector<1x256x52xbf16> to vector<256x52xbf16>
    %c7 = arith.constant 7 : index
    %c0_37 = arith.constant 0 : index
    %c0_38 = arith.constant 0 : index
    %43 = vector.load %arg2[%c7, %c0_37, %c0_38] : memref<13x52x32xbf16, #tpu.memory_space<vmem>>, vector<1x52x32xbf16>
    %44 = vector.shape_cast %43 : vector<1x52x32xbf16> to vector<52x32xbf16>
    %cst_39 = arith.constant dense<0.000000e+00> : vector<256x32xf32>
    %45 = tpu.matmul %42, %44, %cst_39 {dimension_numbers = #tpu.dot_dimension_numbers<[1], [0], [0], [1], [0, 0, 1, 1], [], []>} : vector<256x52xbf16>, vector<52x32xbf16>, vector<256x32xf32> -> vector<256x32xf32>
    %46 = arith.addf %40, %45 : vector<256x32xf32>
    %c0_40 = arith.constant 0 : index
    %c128 = arith.constant 128 : index
    %c0_41 = arith.constant 0 : index
    %47 = vector.load %arg1[%c0_40, %c128, %c0_41] : memref<1x448x52xbf16, #tpu.memory_space<vmem>>, vector<1x256x52xbf16>
    %48 = vector.shape_cast %47 : vector<1x256x52xbf16> to vector<256x52xbf16>
    %c8 = arith.constant 8 : index
    %c0_42 = arith.constant 0 : index
    %c0_43 = arith.constant 0 : index
    %49 = vector.load %arg2[%c8, %c0_42, %c0_43] : memref<13x52x32xbf16, #tpu.memory_space<vmem>>, vector<1x52x32xbf16>
    %50 = vector.shape_cast %49 : vector<1x52x32xbf16> to vector<52x32xbf16>
    %cst_44 = arith.constant dense<0.000000e+00> : vector<256x32xf32>
    %51 = tpu.matmul %48, %50, %cst_44 {dimension_numbers = #tpu.dot_dimension_numbers<[1], [0], [0], [1], [0, 0, 1, 1], [], []>} : vector<256x52xbf16>, vector<52x32xbf16>, vector<256x32xf32> -> vector<256x32xf32>
    %52 = arith.addf %46, %51 : vector<256x32xf32>
    %c0_45 = arith.constant 0 : index
    %c144 = arith.constant 144 : index
    %c0_46 = arith.constant 0 : index
    %53 = vector.load %arg1[%c0_45, %c144, %c0_46] : memref<1x448x52xbf16, #tpu.memory_space<vmem>>, vector<1x256x52xbf16>
    %54 = vector.shape_cast %53 : vector<1x256x52xbf16> to vector<256x52xbf16>
    %c9 = arith.constant 9 : index
    %c0_47 = arith.constant 0 : index
    %c0_48 = arith.constant 0 : index
    %55 = vector.load %arg2[%c9, %c0_47, %c0_48] : memref<13x52x32xbf16, #tpu.memory_space<vmem>>, vector<1x52x32xbf16>
    %56 = vector.shape_cast %55 : vector<1x52x32xbf16> to vector<52x32xbf16>
    %cst_49 = arith.constant dense<0.000000e+00> : vector<256x32xf32>
    %57 = tpu.matmul %54, %56, %cst_49 {dimension_numbers = #tpu.dot_dimension_numbers<[1], [0], [0], [1], [0, 0, 1, 1], [], []>} : vector<256x52xbf16>, vector<52x32xbf16>, vector<256x32xf32> -> vector<256x32xf32>
    %58 = arith.addf %52, %57 : vector<256x32xf32>
    %c0_50 = arith.constant 0 : index
    %c160 = arith.constant 160 : index
    %c0_51 = arith.constant 0 : index
    %59 = vector.load %arg1[%c0_50, %c160, %c0_51] : memref<1x448x52xbf16, #tpu.memory_space<vmem>>, vector<1x256x52xbf16>
    %60 = vector.shape_cast %59 : vector<1x256x52xbf16> to vector<256x52xbf16>
    %c10 = arith.constant 10 : index
    %c0_52 = arith.constant 0 : index
    %c0_53 = arith.constant 0 : index
    %61 = vector.load %arg2[%c10, %c0_52, %c0_53] : memref<13x52x32xbf16, #tpu.memory_space<vmem>>, vector<1x52x32xbf16>
    %62 = vector.shape_cast %61 : vector<1x52x32xbf16> to vector<52x32xbf16>
    %cst_54 = arith.constant dense<0.000000e+00> : vector<256x32xf32>
    %63 = tpu.matmul %60, %62, %cst_54 {dimension_numbers = #tpu.dot_dimension_numbers<[1], [0], [0], [1], [0, 0, 1, 1], [], []>} : vector<256x52xbf16>, vector<52x32xbf16>, vector<256x32xf32> -> vector<256x32xf32>
    %64 = arith.addf %58, %63 : vector<256x32xf32>
    %c0_55 = arith.constant 0 : index
    %c176 = arith.constant 176 : index
    %c0_56 = arith.constant 0 : index
    %65 = vector.load %arg1[%c0_55, %c176, %c0_56] : memref<1x448x52xbf16, #tpu.memory_space<vmem>>, vector<1x256x52xbf16>
    %66 = vector.shape_cast %65 : vector<1x256x52xbf16> to vector<256x52xbf16>
    %c11 = arith.constant 11 : index
    %c0_57 = arith.constant 0 : index
    %c0_58 = arith.constant 0 : index
    %67 = vector.load %arg2[%c11, %c0_57, %c0_58] : memref<13x52x32xbf16, #tpu.memory_space<vmem>>, vector<1x52x32xbf16>
    %68 = vector.shape_cast %67 : vector<1x52x32xbf16> to vector<52x32xbf16>
    %cst_59 = arith.constant dense<0.000000e+00> : vector<256x32xf32>
    %69 = tpu.matmul %66, %68, %cst_59 {dimension_numbers = #tpu.dot_dimension_numbers<[1], [0], [0], [1], [0, 0, 1, 1], [], []>} : vector<256x52xbf16>, vector<52x32xbf16>, vector<256x32xf32> -> vector<256x32xf32>
    %70 = arith.addf %64, %69 : vector<256x32xf32>
    %c0_60 = arith.constant 0 : index
    %c192 = arith.constant 192 : index
    %c0_61 = arith.constant 0 : index
    %71 = vector.load %arg1[%c0_60, %c192, %c0_61] : memref<1x448x52xbf16, #tpu.memory_space<vmem>>, vector<1x256x52xbf16>
    %72 = vector.shape_cast %71 : vector<1x256x52xbf16> to vector<256x52xbf16>
    %c12 = arith.constant 12 : index
    %c0_62 = arith.constant 0 : index
    %c0_63 = arith.constant 0 : index
    %73 = vector.load %arg2[%c12, %c0_62, %c0_63] : memref<13x52x32xbf16, #tpu.memory_space<vmem>>, vector<1x52x32xbf16>
    %74 = vector.shape_cast %73 : vector<1x52x32xbf16> to vector<52x32xbf16>
    %cst_64 = arith.constant dense<0.000000e+00> : vector<256x32xf32>
    %75 = tpu.matmul %72, %74, %cst_64 {dimension_numbers = #tpu.dot_dimension_numbers<[1], [0], [0], [1], [0, 0, 1, 1], [], []>} : vector<256x52xbf16>, vector<52x32xbf16>, vector<256x32xf32> -> vector<256x32xf32>
    %76 = arith.addf %70, %75 : vector<256x32xf32>
    %77 = vector.extract_strided_slice %76 {offsets = [0, 0], sizes = [256, 16], strides = [1, 1]} : vector<256x32xf32> to vector<256x16xf32>
    %78 = vector.extract_strided_slice %76 {offsets = [0, 16], sizes = [256, 16], strides = [1, 1]} : vector<256x32xf32> to vector<256x16xf32>
    %79 = arith.mulf %77, %77 : vector<256x16xf32>
    %80 = arith.mulf %78, %78 : vector<256x16xf32>
    %81 = arith.addf %79, %80 : vector<256x16xf32>
    %82 = math.sqrt %81 : vector<256x16xf32>
    %c0_65 = arith.constant 0 : index
    %c0_66 = arith.constant 0 : index
    %83 = vector.load %arg3[%c0_65, %c0_66] : memref<256x256xbf16, #tpu.memory_space<vmem>>, vector<256x256xbf16>
    %84 = arith.truncf %82 : vector<256x16xf32> to vector<256x16xbf16>
    %cst_67 = arith.constant dense<0.000000e+00> : vector<256x16xf32>
    %85 = tpu.matmul %83, %84, %cst_67 {dimension_numbers = #tpu.dot_dimension_numbers<[1], [0], [0], [1], [0, 0, 1, 1], [], []>} : vector<256x256xbf16>, vector<256x16xbf16>, vector<256x16xf32> -> vector<256x16xf32>
    %cst_68 = arith.constant 4.000000e-02 : f32
    %86 = vector.broadcast %cst_68 : f32 to vector<256x16xf32>
    %87 = arith.mulf %85, %86 : vector<256x16xf32>
    %c0_69 = arith.constant 0 : index
    %c0_70 = arith.constant 0 : index
    %c0_71 = arith.constant 0 : index
    %88 = vector.load %arg4[%c0_69, %c0_70, %c0_71] : memref<1x256x16xf32, #tpu.memory_space<vmem>>, vector<1x256x16xf32>
    %89 = vector.shape_cast %88 : vector<1x256x16xf32> to vector<256x16xf32>
    %90 = vector.shape_cast %87 : vector<256x16xf32> to vector<1x256x16xf32>
    tpu.vector_store %arg4[%c0_69, %c0_70, %c0_71], %90 {strides = array<i32>} : memref<1x256x16xf32, #tpu.memory_space<vmem>>, vector<1x256x16xf32>,
    return
  }
  func.func @transform_0(%arg0: i32) -> (i32, i32, i32) {
    %c0_i32 = arith.constant 0 : i32
    %c0_i32_0 = arith.constant 0 : i32
    %c0_i32_1 = arith.constant 0 : i32
    return %arg0, %c0_i32, %c0_i32_0 : i32, i32, i32
  }
  func.func @transform_1(%arg0: i32) -> (i32, i32, i32) {
    %c0_i32 = arith.constant 0 : i32
    %c0_i32_0 = arith.constant 0 : i32
    %c0_i32_1 = arith.constant 0 : i32
    %c0_i32_2 = arith.constant 0 : i32
    return %c0_i32, %c0_i32_0, %c0_i32_1 : i32, i32, i32
  }
  func.func @transform_2(%arg0: i32) -> (i32, i32) {
    %c0_i32 = arith.constant 0 : i32
    %c0_i32_0 = arith.constant 0 : i32
    %c0_i32_1 = arith.constant 0 : i32
    return %c0_i32, %c0_i32_0 : i32, i32
  }
  func.func @transform_3(%arg0: i32) -> (i32, i32, i32) {
    %c0_i32 = arith.constant 0 : i32
    %c0_i32_0 = arith.constant 0 : i32
    %c0_i32_1 = arith.constant 0 : i32
    return %arg0, %c0_i32, %c0_i32_0 : i32, i32, i32
  }
}

</mosaic_0001>

<bundles_post_ra>
// kernel: net1_forward.1
= control target key start
LH: loop header
LB: loop body
LE: loop exit
PB: predicated region body
PF: predicated region fallthrough
CT: control target
= control target key end

     0   :  { %s8147_s12 = smov 0   ;;  %s9630_s0 = inlined_call_operand.vmem [shape: bf16[2,448,52], index: 0, kind: input, shape index: {}]   ;;  %s9631_s1 = inlined_call_operand.vmem [shape: bf16[13,52,32], index: 1, kind: input, shape index: {}]   ;;  %s9632_s2 = inlined_call_operand.vmem [shape: bf16[256,256], index: 2, kind: input, shape index: {}]   ;;  %s9633_s3 = inlined_call_operand.vmem [shape: f32[2,256,16], index: 3, kind: output, shape index: {}]  }
   0x1 LB: > { %s5869_s13 = sadd.s32 4294967295, %s8124_s12   ;;  %p5873_p0 = scmp.ge.s32.totalorder %s8124_s12, 1  ;;  %s8124_s12 = sphi %s8147_s12, %s13_s12  }
   0x2   : > { %p137_p1 = scmp.lt.s32.totalorder %s8124_s12, 3 }
   0x4   : > { %p138_p2 = pnand %p5873_p0, %p137_p1 }
   0x5   : > { %v7757_v0 = vld [vmem:[%s9631_s1 + $0x1c] sm:$0xff] (!%p138_p2)   ;;  %v7758_v1 = vld [vmem:[%s9631_s1 + $0x8c] sm:$0xff] (!%p138_p2)   ;;  %p161_p3 = scmp.lt.s32.totalorder (!%p138_p2), %s5869_s13, 1  ;;  %v7759_v2 = vld [vmem:[%s9631_s1 + $0x24] sm:$0xff] (!%p138_p2)   ;;  %vm322_vm0 = vcmask (!%p138_p2), 424960   ;;  %vm371_vm1 = vcmask (!%p138_p2), 1041408  }
   0x6   : > { %141 = sbr.rel (%p138_p2) target bundleno = 1204 (0x4b4), region = 32  ;;  %6821 = vmatprep.subr.bf16.mxu1 (!%p138_p2), %v7757_v0  ;;  %7021 = vmatprep.subr.bf16.mxu0 (!%p138_p2), %v7758_v1  ;;  %v7760_v3 = vld [vmem:[%s9631_s1 + $0x94] sm:$0xff] (!%p138_p2)   ;;  %v7761_v4 = vld [vmem:[%s9631_s1 + $0x2c] sm:$0xff] (!%p138_p2)   ;;  %v7762_v5 = vld [vmem:[%s9631_s1 + $0x9c] sm:$0xff] (!%p138_p2)  }
   0x7   : > { %6822 = vmatpush3.bf16.msra.mxu1 (!%p138_p2), %v7757_v0  ;;  %7022 = vmatpush3.bf16.msra.mxu0 (!%p138_p2), %v7758_v1  ;;  %v7763_v6 = vld [vmem:[%s9631_s1 + $0x34] ss:$0 sps:$4 sm:$0x33] (!%p138_p2)   ;;  %v7764_v7 = vld [vmem:[%s9631_s1 + $0xa4] ss:$0 sps:$4 sm:$0x33] (!%p138_p2)  }
   0x8   : > { %6823 = vmatprep.subr.bf16.mxu1 (!%p138_p2), %v7759_v2  ;;  %7023 = vmatprep.subr.bf16.mxu0 (!%p138_p2), %v7760_v3  ;;  %v373_v10 = vsel (!%p138_p2), %vm371_vm1, %v7763_v6, 0  ;;  %v7769_v11 = vld [vmem:[%s9631_s1 + $0xa8] sm:$0xff] (!%p138_p2)   ;;  %v8201_v12 = vsel (!%p138_p2), %vm371_vm1, %v7764_v7, 0  ;;  %v7774_v16 = vld [vmem:[%s9631_s1 + $0xb0] sm:$0xff] (!%p138_p2)   ;;  %v7779_v20 = vld [vmem:[%s9631_s1 + $0xb8] sm:$0xff] (!%p138_p2)  }
   0x9   : > { %v7784_v23 = vld [vmem:[%s9631_s1 + $0xc0] ss:$0 sps:$4 sm:$0x33] (!%p138_p2)   ;;  %v7789_v28 = vld [vmem:[%s9631_s1 + $0xc4] sm:$0xff] (!%p138_p2)   ;;  %v7804_v39 = vld [vmem:[%s9631_s1 + $0x10] sm:$0xff] (!%p138_p2)  }
   0xa   : > { %v2459_v26 = vsel (!%p138_p2), %vm371_vm1, %v7784_v23, 0  ;;  %v7797_v33 = vld [vmem:[%s9631_s1] sm:$0xff] (!%p138_p2)   ;;  %v7800_v35 = vld [vmem:[%s9631_s1 + $0x8] sm:$0xff] (!%p138_p2)   ;;  %v7806_v42 = vld [vmem:[%s9631_s1 + $0x18] ss:$0 sps:$4 sm:$0x33] (!%p138_p2)  }
   0xb   : > { %6824 = vmatpush3.bf16.msra.mxu1 (!%p138_p2), %v7759_v2  ;;  %7024 = vmatpush3.bf16.msra.mxu0 (!%p138_p2), %v7760_v3  ;;  %v7799_v41 = vld [vmem:[%s9631_s1 + $0xcc] sm:$0xff] (!%p138_p2)   ;;  %v7810_v44 = vld [vmem:[%s9631_s1 + $0xd4] sm:$0xff] (!%p138_p2)   ;;  %v566_v46 = vsel (!%p138_p2), %vm371_vm1, %v7806_v42, 0  ;;  %v7815_v49 = vld [vmem:[%s9631_s1 + $0xdc] ss:$0 sps:$4 sm:$0x33] (!%p138_p2)  }
   0xc   : > { %6825 = vmatprep.subr.bf16.mxu1 (!%p138_p2), %v7761_v4  ;;  %7025 = vmatprep.subr.bf16.mxu0 (!%p138_p2), %v7762_v5  ;;  %v2844_v52 = vsel (!%p138_p2), %vm371_vm1, %v7815_v49, 0  ;;  %v7820_v53 = vld [vmem:[%s9631_s1 + $0xe0] sm:$0xff] (!%p138_p2)   ;;  %v7824_v56 = vld [vmem:[%s9631_s1 + $0x38] sm:$0xff] (!%p138_p2)   ;;  %v7829_v0 = vld [vmem:[%s9631_s1 + $0x48] sm:$0xff] (!%p138_p2)  }
   0xd   : > { %s9635_s13 = smov (!%p161_p3, %s5869_s13), 1  ;;  %v7827_v63 = vld [vmem:[%s9631_s1 + $0x40] sm:$0xff]   ;;  %v7831_v2 = vld [vmem:[%s9631_s1 + $0x50] ss:$0 sps:$4 sm:$0x33]  }
   0xe   : > { %s7747_s26 = smul.u32 224, %s9635_s13  ;;  %s6448_s23 = sshll.u32 %s9635_s13, 8 }
   0xf   : > { %6826 = vmatpush3.bf16.msra.mxu1 %v7761_v4  ;;  %7026 = vmatpush3.bf16.msra.mxu0 %v7762_v5  ;;  %v919_v4 = vsel %vm371_vm1, %v7831_v2, 0 }
  0x10   : > { %s8185_s6 = scalar_lea.vmem %s9630_s0, %s7747_s26  ;;  %7733 = vmatprep.subr.msk.bf16.mxu1 %vm371_vm1, %v7763_v6  ;;  %7738 = vmatprep.subr.msk.bf16.mxu0 %vm371_vm1, %v7764_v7  ;;  %s9561_s26 = scalar_lea.vmem %s9633_s3, %s6448_s23 }
  0x11   : > { %v8188_v8 = vld [vmem:[%s8185_s6 + $0x8] sm:$0xff]   ;;  %v8204_v13 = vld [vmem:[%s8185_s6 + $0x10] sm:$0xff]   ;;  %v8208_v15 = vld [vmem:[%s8185_s6 + $0x18] sm:$0xff]  }
  0x12   : > { %v7766_v9 = vld [vmem:[%s8185_s6 + $0x28] sm:$0xff]   ;;  %6829 = vmatprep.mubr.msk.bf16.mxu1 %vm322_vm0, %v8188_v8  ;;  %v7768_v14 = vld [vmem:[%s8185_s6 + $0x30] sm:$0xff]   ;;  %v7771_v17 = vld [vmem:[%s8185_s6 + $0x38] sm:$0xff]  }
  0x13   : > { %7029 = vmatprep.mubr.msk.bf16.mxu0 %vm322_vm0, %v7766_v9  ;;  %6828 = vmatpush3.bf16.msra.mxu1 %v373_v10  ;;  %v8222_v18 = vld [vmem:[%s8185_s6 + $0x20] sm:$0xff]   ;;  %v8229_v21 = vld [vmem:[%s8185_s6 + $0x28] sm:$0xff]   ;;  %v8242_v24 = vld [vmem:[%s8185_s6 + $0x30] sm:$0xff]  }
  0x14   : > { %7028 = vmatpush3.bf16.msra.mxu0 %v8201_v12  ;;  %v7773_v19 = vld [vmem:[%s8185_s6 + $0x40] sm:$0xff]   ;;  %v7776_v22 = vld [vmem:[%s8185_s6 + $0x48] sm:$0xff]   ;;  %v7778_v25 = vld [vmem:[%s8185_s6 + $0x50] sm:$0xff]   ;;  %6861 = vmatprep.subr.bf16.mxu1 %v7797_v33 }
  0x15   : > { %7061 = vmatprep.subr.bf16.mxu0 %v7769_v11  ;;  %v8248_v27 = vld [vmem:[%s8185_s6 + $0x38] sm:$0xff]   ;;  %v8261_v30 = vld [vmem:[%s8185_s6 + $0x40] sm:$0xff]   ;;  %v8265_v32 = vld [vmem:[%s8185_s6 + $0x48] sm:$0xff]  }
  0x16   : > { %6830 = vmatmul.mubr.msk.bf16.vlgmr.msra.gmra.mrb[0].mxu1 %vm322_vm0, %v8204_v13  ;;  %v7781_v29 = vld [vmem:[%s8185_s6 + $0x58] sm:$0xff]   ;;  %v7783_v31 = vld [vmem:[%s8185_s6 + $0x60] sm:$0xff]   ;;  %v7786_v34 = vld [vmem:[%s8185_s6 + $0x30] sm:$0xff]  }
  0x17   : > { %7030 = vmatmul.mubr.msk.bf16.vlgmr.msra.gmra.mrb[0].mxu0 %vm322_vm0, %v7768_v14  ;;  %6833 = vmatprep.mubr.msk.bf16.mxu1 %vm322_vm0, %v8208_v15  ;;  %v8281_v36 = vld [vmem:[%s8185_s6 + $0x50] sm:$0xff]   ;;  %v7788_v37 = vld [vmem:[%s8185_s6 + $0x38] sm:$0xff]   ;;  %v7791_v40 = vld [vmem:[%s8185_s6 + $0x40] sm:$0xff]  }
  0x18   : > { %7062 = vmatpush3.bf16.msra.mxu0 %v7769_v11  ;;  %7033 = vmatprep.mubr.msk.bf16.mxu0 %vm322_vm0, %v7771_v17  ;;  %v8285_v38 = vld [vmem:[%s8185_s6 + $0x58] sm:$0xff]   ;;  %v8304_v43 = vld [vmem:[%s8185_s6 + $0x60] sm:$0xff]   ;;  %v7793_v45 = vld [vmem:[%s8185_s6 + $0x48] sm:$0xff]  }
  0x19   : > { %7063 = vmatprep.subr.bf16.mxu0 %v7774_v16  ;;  %6862 = vmatpush3.bf16.msra.mxu1 %v7797_v33  ;;  %v8313_v47 = vld [vmem:[%s8185_s6 + $0x68] sm:$0xff]   ;;  %v7795_v48 = vld [vmem:[%s8185_s6 + $0x50] sm:$0xff]   ;;  %v7798_v51 = vld [vmem:[%s8185_s6 + $0x58] sm:$0xff]  }
  0x1a   : > { %6863 = vmatprep.subr.bf16.mxu1 %v7800_v35  ;;  %v8326_v50 = vld [vmem:[%s8185_s6 + $0x70] sm:$0xff]   ;;  %v8335_v54 = vld [vmem:[%s8185_s6 + $0x78] sm:$0xff]   ;;  %v7802_v55 = vld [vmem:[%s8185_s6 + $0x60] sm:$0xff]  }
  0x1b   : > { %v7803_v57 = vld [vmem:[%s8185_s6 + $0x80] sm:$0xff]   ;;  %v7805_v58 = vld [vmem:[%s8185_s6 + $0x68] sm:$0xff]   ;;  %v7808_v60 = vld [vmem:[%s8185_s6 + $0x70] sm:$0xff]  }
  0x1c   : > { %7064 = vmatpush3.bf16.msra.mxu0 %v7774_v16  ;;  %v7807_v59 = vld [vmem:[%s8185_s6] sm:$0xff]   ;;  %v7809_v61 = vld [vmem:[%s8185_s6 + $0x78] sm:$0xff]   ;;  %v7812_v1 = vld [vmem:[%s8185_s6 + $0x88] sm:$0xff]  }
  0x1d   : > { %7065 = vmatprep.subr.bf16.mxu0 %v7779_v20  ;;  %6864 = vmatpush3.bf16.msra.mxu1 %v7800_v35  ;;  %v7811_v62 = vld [vmem:[%s8185_s6 + $0x80] sm:$0xff]   ;;  %v7813_v3 = vld [vmem:[%s8185_s6 + $0x90] sm:$0xff]   ;;  %v7814_v5 = vld [vmem:[%s8185_s6 + $0x98] sm:$0xff]  }
  0x1e   : > { %6834 = vmatmul.mubr.msk.bf16.gmra.mrb[4].mxu1 %vm322_vm0, %v8222_v18  ;;  %6865 = vmatprep.subr.bf16.mxu1 %v7804_v39  ;;  %v7816_v6 = vld [vmem:[%s8185_s6 + $0xa0] sm:$0xff]   ;;  %v7817_v7 = vld [vmem:[%s8185_s6 + $0xa8] sm:$0xff]   ;;  %v7818_v9 = vld [vmem:[%s8185_s6 + $0x38] sm:$0xff]  }
  0x1f   : > { %7034 = vmatmul.mubr.msk.bf16.gmra.mrb[4].mxu0 %vm322_vm0, %v7773_v19  ;;  %6837 = vmatprep.mubr.msk.bf16.mxu1 %vm322_vm0, %v8229_v21  ;;  %v7819_v10 = vld [vmem:[%s8185_s6 + $0x40] sm:$0xff]   ;;  %v7821_v11 = vld [vmem:[%s8185_s6 + $0x48] sm:$0xff]   ;;  %v7836_v14 = vld [vmem:[%s9631_s1 + $0xf0] sm:$0xff]  }
  0x20   : > { %7037 = vmatprep.mubr.msk.bf16.mxu0 %vm322_vm0, %v7776_v22  ;;  %7066 = vmatpush3.bf16.msra.mxu0 %v7779_v20  ;;  %v7845_v16 = vld [vmem:[%s9631_s1 + $0xf8] ss:$0 sps:$4 sm:$0x33]   ;;  %v8431_v19 = vld [vmem:[%s9631_s1 + $0xfc] sm:$0xff]   ;;  %v7830_v22 = vld [vmem:[%s8185_s6 + $0x70] sm:$0xff]  }
  0x21   : > { %7740 = vmatprep.subr.msk.bf16.mxu0 %vm371_vm1, %v7784_v23  ;;  %6866 = vmatpush3.bf16.msra.mxu1 %v7804_v39  ;;  %v7823_v17 = vld [vmem:[%s8185_s6 + $0x58] sm:$0xff]   ;;  %v7825_v20 = vld [vmem:[%s8185_s6 + $0x60] sm:$0xff]   ;;  %v7832_v23 = vld [vmem:[%s8185_s6 + $0x10] sm:$0xff]  }
  0x22   : > { %7734 = vmatprep.subr.msk.bf16.mxu1 %vm371_vm1, %v7806_v42  ;;  %v7841_v33 = vld [vmem:[%s8185_s6 + $0x30] sm:$0xff]   ;;  %v7871_v35 = vld [vmem:[%s9631_s1 + $0x6c] ss:$0 sps:$4 sm:$0x33]   ;;  %v7844_v39 = vld [vmem:[%s8185_s6 + $0xa0] sm:$0xff]  }
  0x23   : > { %v7848_v42 = vld [vmem:[%s8185_s6 + $0x48] sm:$0xff]  }
  0x24   : > { %7068 = vmatpush3.bf16.msra.mxu0 %v2459_v26  ;;  %v7835_v26 = vld [vmem:[%s8185_s6 + $0x80] sm:$0xff]  }
  0x25   : > { %7101 = vmatprep.subr.bf16.mxu0 %v7789_v28  ;;  %6868 = vmatpush3.bf16.msra.mxu1 %v566_v46  ;;  %v7852_v46 = vld [vmem:[%s8185_s6 + $0x58] sm:$0xff]  }
  0x26   : > { %6838 = vmatmul.mubr.msk.bf16.gmra.mrb[8].mxu1 %vm322_vm0, %v8242_v24  ;;  %6901 = vmatprep.subr.bf16.mxu1 %v7824_v56 }
  0x27   : > { %7038 = vmatmul.mubr.msk.bf16.gmra.mrb[8].mxu0 %vm322_vm0, %v7778_v25  ;;  %6841 = vmatprep.mubr.msk.bf16.mxu1 %vm322_vm0, %v8248_v27  ;;  %v7834_v25 = vld [vmem:[%s8185_s6 + $0x18] sm:$0xff]  }
  0x28   : > { %7041 = vmatprep.mubr.msk.bf16.mxu0 %vm322_vm0, %v7781_v29  ;;  %v7865_v29 = vld [vmem:[%s9631_s1 + $0x5c] sm:$0xff]  }
  0x2e   : > { %6842 = vmatmul.mubr.msk.bf16.gmra.mrb[12].mxu1 %vm322_vm0, %v8261_v30 }
  0x2f   : > { %7042 = vmatmul.mubr.msk.bf16.gmra.mrb[12].mxu0 %vm322_vm0, %v7783_v31  ;;  %6845 = vmatprep.mubr.msk.bf16.mxu1 %vm322_vm0, %v8265_v32  ;;  %v7840_v31 = vld [vmem:[%s8185_s6 + $0x90] sm:$0xff]  }
  0x30   : > { %7069 = vmatprep.mubr.msk.bf16.mxu0 %vm322_vm0, %v7786_v34  ;;  %v7842_v34 = vld [vmem:[%s8185_s6 + $0x98] sm:$0xff]  }
  0x36   : > { %6846 = vmatmul.mubr.msk.bf16.gmra.mrb[16].mxu1 %vm322_vm0, %v8281_v36 }
  0x37   : > { %7070 = vmatmul.mubr.msk.bf16.vlgmr.msra.gmra.mrb[0].mxu0 %vm322_vm0, %v7788_v37  ;;  %6849 = vmatprep.mubr.msk.bf16.mxu1 %vm322_vm0, %v8285_v38  ;;  %v1304_v37 = vsel %vm371_vm1, %v7871_v35, 0 }
  0x38   : > { %7102 = vmatpush3.bf16.msra.mxu0 %v7789_v28  ;;  %7073 = vmatprep.mubr.msk.bf16.mxu0 %vm322_vm0, %v7791_v40  ;;  %v7838_v28 = vld [vmem:[%s8185_s6 + $0x88] sm:$0xff]   ;;  %v7846_v40 = vld [vmem:[%s8185_s6 + $0x40] sm:$0xff]  }
  0x39   : > { %7103 = vmatprep.subr.bf16.mxu0 %v7799_v41 }
  0x3c   : > { %7104 = vmatpush3.bf16.msra.mxu0 %v7799_v41  ;;  %v7847_v41 = vld [vmem:[%s8185_s6 + $0xa8] sm:$0xff]  }
  0x3d   : > { %7105 = vmatprep.subr.bf16.mxu0 %v7810_v44 }
  0x3e   : > { %6850 = vmatmul.mubr.msk.bf16.gmra.mrb[20].mxu1 %vm322_vm0, %v8304_v43 }
  0x3f   : > { %7074 = vmatmul.mubr.msk.bf16.gmra.mrb[4].mxu0 %vm322_vm0, %v7793_v45  ;;  %6853 = vmatprep.mubr.msk.bf16.mxu1 %vm322_vm0, %v8313_v47  ;;  %v7851_v45 = vld [vmem:[%s8185_s6 + $0x40] sm:$0xff]  }
  0x40   : > { %7077 = vmatprep.mubr.msk.bf16.mxu0 %vm322_vm0, %v7795_v48  ;;  %7106 = vmatpush3.bf16.msra.mxu0 %v7810_v44  ;;  %v7850_v44 = vld [vmem:[%s8185_s6 + $0x50] sm:$0xff]   ;;  %v7855_v48 = vld [vmem:[%s8185_s6 + $0x60] sm:$0xff]  }
  0x41   : > { %7741 = vmatprep.subr.msk.bf16.mxu0 %vm371_vm1, %v7815_v49  ;;  %v7856_v49 = vld [vmem:[%s8185_s6 + $0x50] sm:$0xff]  }
  0x44   : > { %7108 = vmatpush3.bf16.msra.mxu0 %v2844_v52  ;;  %v7876_v52 = vld [vmem:[%s9631_s1 + $0x10c] sm:$0xff]  }
  0x45   : > { %7141 = vmatprep.subr.bf16.mxu0 %v7820_v53 }
  0x46   : > { %6854 = vmatmul.mubr.msk.bf16.gmra.mrb[24].mxu1 %vm322_vm0, %v8326_v50 }
  0x47   : > { %7078 = vmatmul.mubr.msk.bf16.gmra.mrb[8].mxu0 %vm322_vm0, %v7798_v51  ;;  %6857 = vmatprep.mubr.msk.bf16.mxu1 %vm322_vm0, %v8335_v54  ;;  %v7857_v51 = vld [vmem:[%s8185_s6 + $0x68] sm:$0xff]  }
  0x48   : > { %7081 = vmatprep.mubr.msk.bf16.mxu0 %vm322_vm0, %v7802_v55  ;;  %v7860_v55 = vld [vmem:[%s8185_s6 + $0x60] sm:$0xff]  }
  0x4e   : > { %6858 = vmatmul.mubr.msk.bf16.gmra.mrb[28].mxu1 %vm322_vm0, %v7803_v57  ;;  %v7861_v57 = vld [vmem:[%s8185_s6 + $0x78] sm:$0xff]  }
  0x4f   : > { %7082 = vmatmul.mubr.msk.bf16.gmra.mrb[12].mxu0 %vm322_vm0, %v7805_v58  ;;  %6869 = vmatprep.mubr.msk.bf16.mxu1 %vm322_vm0, %v7807_v59  ;;  %v8530_v59 = vld [vmem:[%s9631_s1 + $0x118] sm:$0xff]  }
  0x50   : > { %7085 = vmatprep.mubr.msk.bf16.mxu0 %vm322_vm0, %v7808_v60  ;;  %v7863_v60 = vld [vmem:[%s8185_s6 + $0x68] sm:$0xff]  }
  0x56   : > { %6870 = vmatmul.mubr.msk.bf16.vlgmr.msra.gmra.mrb[0].mxu1 %vm322_vm0, %v8188_v8  ;;  %v7862_v8 = vld [vmem:[%s9631_s1 + $0x54] sm:$0xff]  }
  0x57   : > { %7086 = vmatmul.mubr.msk.bf16.gmra.mrb[16].mxu0 %vm322_vm0, %v7809_v61  ;;  %6873 = vmatprep.mubr.msk.bf16.mxu1 %vm322_vm0, %v8204_v13  ;;  %v7826_v13 = vld [vmem:[%s9631_s1 + $0xe8] sm:$0xff]   ;;  %v7866_v61 = vld [vmem:[%s8185_s6 + $0x80] sm:$0xff]  }
  0x58   : > { %7089 = vmatprep.mubr.msk.bf16.mxu0 %vm322_vm0, %v7811_v62  ;;  %6902 = vmatpush3.bf16.msra.mxu1 %v7824_v56  ;;  %v7885_v56 = vld [vmem:[%s9631_s1 + $0x114] ss:$0 sps:$4 sm:$0x33]  }
  0x59   : > { %6903 = vmatprep.subr.bf16.mxu1 %v7827_v63  ;;  %v3614_v58 = vsel %vm371_vm1, %v7885_v56, 0  ;;  %v7867_v62 = vld [vmem:[%s8185_s6 + $0x70] sm:$0xff]  }
  0x5c   : > { %6904 = vmatpush3.bf16.msra.mxu1 %v7827_v63  ;;  %v7868_v63 = vld [vmem:[%s8185_s6 + $0x88] sm:$0xff]  }
  0x5d   : > { %6905 = vmatprep.subr.bf16.mxu1 %v7829_v0 }
  0x5e   : > { %6874 = vmatmul.mubr.msk.bf16.gmra.mrb[4].mxu1 %vm322_vm0, %v8208_v15  ;;  %v7822_v15 = vld [vmem:[%s8185_s6 + $0x50] sm:$0xff]  }
  0x5f   : > { %7090 = vmatmul.mubr.msk.bf16.gmra.mrb[20].mxu0 %vm322_vm0, %v7812_v1  ;;  %6877 = vmatprep.mubr.msk.bf16.mxu1 %vm322_vm0, %v8222_v18  ;;  %v3229_v18 = vsel %vm371_vm1, %v7845_v16, 0  ;;  %v7872_v1 = vld [vmem:[%s8185_s6 + $0x18] sm:$0xff]  }
  0x60   : > { %7093 = vmatprep.mubr.msk.bf16.mxu0 %vm322_vm0, %v7813_v3  ;;  %6906 = vmatpush3.bf16.msra.mxu1 %v7829_v0  ;;  %v7870_v0 = vld [vmem:[%s8185_s6 + $0x78] sm:$0xff]   ;;  %v7874_v3 = vld [vmem:[%s8185_s6 + $0x20] sm:$0xff]  }
  0x61   : > { %7735 = vmatprep.subr.msk.bf16.mxu1 %vm371_vm1, %v7831_v2  ;;  %v7873_v2 = vld [vmem:[%s8185_s6 + $0x80] sm:$0xff]  }
  0x64   : > { %6908 = vmatpush3.bf16.msra.mxu1 %v919_v4  ;;  %v7875_v4 = vld [vmem:[%s8185_s6 + $0x88] sm:$0xff]  }
  0x65   : > { %6941 = vmatprep.subr.bf16.mxu1 %v7862_v8 }
  0x66   : > { %6878 = vmatmul.mubr.msk.bf16.gmra.mrb[8].mxu1 %vm322_vm0, %v8229_v21  ;;  %v7828_v21 = vld [vmem:[%s8185_s6 + $0x68] sm:$0xff]  }
  0x67   : > { %7094 = vmatmul.mubr.msk.bf16.gmra.mrb[24].mxu0 %vm322_vm0, %v7814_v5  ;;  %6881 = vmatprep.mubr.msk.bf16.mxu1 %vm322_vm0, %v8242_v24  ;;  %v7833_v24 = vld [vmem:[%s8185_s6 + $0x78] sm:$0xff]   ;;  %v7877_v5 = vld [vmem:[%s8185_s6 + $0x28] sm:$0xff]  }
  0x68   : > { %7097 = vmatprep.mubr.msk.bf16.mxu0 %vm322_vm0, %v7816_v6  ;;  %v7878_v6 = vld [vmem:[%s8185_s6 + $0x90] sm:$0xff]  }
  0x6e   : > { %6882 = vmatmul.mubr.msk.bf16.gmra.mrb[12].mxu1 %vm322_vm0, %v8248_v27  ;;  %v7837_v27 = vld [vmem:[%s8185_s6 + $0x20] sm:$0xff]  }
  0x6f   : > { %7098 = vmatmul.mubr.msk.bf16.gmra.mrb[28].mxu0 %vm322_vm0, %v7817_v7  ;;  %6885 = vmatprep.mubr.msk.bf16.mxu1 %vm322_vm0, %v8261_v30  ;;  %v7839_v30 = vld [vmem:[%s8185_s6 + $0x28] sm:$0xff]   ;;  %v7905_v7 = vld [vmem:[%s9631_s1 + $0x78] sm:$0xff]  }
  0x70   : > { %7109 = vmatprep.mubr.msk.bf16.mxu0 %vm322_vm0, %v7818_v9  ;;  %v7909_v9 = vld [vmem:[%s9631_s1 + $0x80] sm:$0xff]  }
  0x76   : > { %6886 = vmatmul.mubr.msk.bf16.gmra.mrb[16].mxu1 %vm322_vm0, %v8265_v32  ;;  %v7869_v32 = vld [vmem:[%s9631_s1 + $0x64] sm:$0xff]  }
  0x77   : > { %7110 = vmatmul.mubr.msk.bf16.vlgmr.msra.gmra.mrb[0].mxu0 %vm322_vm0, %v7819_v10  ;;  %6889 = vmatprep.mubr.msk.bf16.mxu1 %vm322_vm0, %v8281_v36  ;;  %v7843_v36 = vld [vmem:[%s8185_s6 + $0x38] sm:$0xff]  }
  0x78   : > { %7142 = vmatpush3.bf16.msra.mxu0 %v7820_v53  ;;  %7113 = vmatprep.mubr.msk.bf16.mxu0 %vm322_vm0, %v7821_v11  ;;  %v7858_v53 = vld [vmem:[%s8185_s6 + $0x58] sm:$0xff]  }
  0x79   : > { %7143 = vmatprep.subr.bf16.mxu0 %v7826_v13  ;;  %v7880_v10 = vld [vmem:[%s8185_s6 + $0x98] sm:$0xff]  }
  0x7a   : > { %v7881_v11 = vld [vmem:[%s8185_s6 + $0x38] sm:$0xff]  }
  0x7c   : > { %7144 = vmatpush3.bf16.msra.mxu0 %v7826_v13  ;;  %v7882_v13 = vld [vmem:[%s8185_s6 + $0xa0] sm:$0xff]  }
  0x7d   : > { %7145 = vmatprep.subr.bf16.mxu0 %v7836_v14 }
  0x7e   : > { %6890 = vmatmul.mubr.msk.bf16.gmra.mrb[20].mxu1 %vm322_vm0, %v8285_v38  ;;  %v8481_v38 = vld [vmem:[%s9631_s1 + $0x70] sm:$0xff]  }
  0x7f   : > { %7114 = vmatmul.mubr.msk.bf16.gmra.mrb[4].mxu0 %vm322_vm0, %v7822_v15  ;;  %6893 = vmatprep.mubr.msk.bf16.mxu1 %vm322_vm0, %v8304_v43  ;;  %v7849_v43 = vld [vmem:[%s8185_s6 + $0xb0] sm:$0xff]   ;;  %v7883_v15 = vld [vmem:[%s8185_s6 + $0x40] sm:$0xff]  }
  0x80   : > { %7117 = vmatprep.mubr.msk.bf16.mxu0 %vm322_vm0, %v7823_v17  ;;  %7146 = vmatpush3.bf16.msra.mxu0 %v7836_v14  ;;  %v7911_v14 = vld [vmem:[%s9631_s1 + $0x88] ss:$0 sps:$4 sm:$0x33]  }
  0x81   : > { %7742 = vmatprep.subr.msk.bf16.mxu0 %vm371_vm1, %v7845_v16  ;;  %v1689_v16 = vsel %vm371_vm1, %v7911_v14, 0  ;;  %v7884_v17 = vld [vmem:[%s8185_s6 + $0xa8] sm:$0xff]  }
  0x84   : > { %7148 = vmatpush3.bf16.msra.mxu0 %v3229_v18  ;;  %v7886_v18 = vld [vmem:[%s8185_s6 + $0x48] sm:$0xff]  }
  0x85   : > { %7181 = vmatprep.subr.bf16.mxu0 %v8431_v19 }
  0x86   : > { %6894 = vmatmul.mubr.msk.bf16.gmra.mrb[24].mxu1 %vm322_vm0, %v8313_v47  ;;  %v7853_v47 = vld [vmem:[%s8185_s6 + $0x48] sm:$0xff]  }
  0x87   : > { %7118 = vmatmul.mubr.msk.bf16.gmra.mrb[8].mxu0 %vm322_vm0, %v7825_v20  ;;  %6897 = vmatprep.mubr.msk.bf16.mxu1 %vm322_vm0, %v8326_v50  ;;  %v7864_v50 = vld [vmem:[%s9631_s1 + $0x104] sm:$0xff]   ;;  %v8584_v20 = vld [vmem:[%s9631_s1 + $0x8c] sm:$0xff]  }
  0x88   : > { %7121 = vmatprep.mubr.msk.bf16.mxu0 %vm322_vm0, %v7828_v21  ;;  %v7888_v21 = vld [vmem:[%s8185_s6 + $0x50] sm:$0xff]  }
  0x8e   : > { %6898 = vmatmul.mubr.msk.bf16.gmra.mrb[28].mxu1 %vm322_vm0, %v8335_v54  ;;  %v7859_v54 = vld [vmem:[%s8185_s6 + $0x70] sm:$0xff]  }
  0x8f   : > { %7122 = vmatmul.mubr.msk.bf16.gmra.mrb[12].mxu0 %vm322_vm0, %v7830_v22  ;;  %6909 = vmatprep.mubr.msk.bf16.mxu1 %vm322_vm0, %v7832_v23  ;;  %v7889_v22 = vld [vmem:[%s8185_s6 + $0xb8] sm:$0xff]  }
  0x90   : > { %7125 = vmatprep.mubr.msk.bf16.mxu0 %vm322_vm0, %v7833_v24  ;;  %v7890_v23 = vld [vmem:[%s8185_s6 + $0x58] sm:$0xff]   ;;  %v7891_v24 = vld [vmem:[%s8185_s6 + $0x48] sm:$0xff]  }
  0x96   : > { %6910 = vmatmul.mubr.msk.bf16.vlgmr.msra.gmra.mrb[0].mxu1 %vm322_vm0, %v7834_v25  ;;  %v7892_v25 = vld [vmem:[%s8185_s6 + $0x60] sm:$0xff]  }
  0x97   : > { %7126 = vmatmul.mubr.msk.bf16.gmra.mrb[16].mxu0 %vm322_vm0, %v7835_v26  ;;  %6913 = vmatprep.mubr.msk.bf16.mxu1 %vm322_vm0, %v7837_v27  ;;  %v7893_v26 = vld [vmem:[%s8185_s6 + $0x50] sm:$0xff]   ;;  %v7895_v27 = vld [vmem:[%s8185_s6 + $0x68] sm:$0xff]  }
  0x98   : > { %7129 = vmatprep.mubr.msk.bf16.mxu0 %vm322_vm0, %v7838_v28  ;;  %6942 = vmatpush3.bf16.msra.mxu1 %v7862_v8  ;;  %v7879_v8 = vld [vmem:[%s8185_s6 + $0x30] sm:$0xff]   ;;  %v7896_v28 = vld [vmem:[%s8185_s6 + $0x58] sm:$0xff]  }
  0x99   : > { %6943 = vmatprep.subr.bf16.mxu1 %v7865_v29 }
  0x9c   : > { %6944 = vmatpush3.bf16.msra.mxu1 %v7865_v29  ;;  %v7904_v29 = vld [vmem:[%s9631_s1 + $0x120] sm:$0xff]  }
  0x9d   : > { %6945 = vmatprep.subr.bf16.mxu1 %v7869_v32 }
  0x9e   : > { %6914 = vmatmul.mubr.msk.bf16.gmra.mrb[4].mxu1 %vm322_vm0, %v7839_v30  ;;  %v7916_v30 = vld [vmem:[%s9631_s1 + $0x128] sm:$0xff]  }
  0x9f   : > { %7130 = vmatmul.mubr.msk.bf16.gmra.mrb[20].mxu0 %vm322_vm0, %v7840_v31  ;;  %6917 = vmatprep.mubr.msk.bf16.mxu1 %vm322_vm0, %v7841_v33  ;;  %v7897_v31 = vld [vmem:[%s8185_s6 + $0x70] sm:$0xff]   ;;  %v7899_v33 = vld [vmem:[%s8185_s6 + $0x78] sm:$0xff]  }
  0xa0   : > { %7133 = vmatprep.mubr.msk.bf16.mxu0 %vm322_vm0, %v7842_v34  ;;  %6946 = vmatpush3.bf16.msra.mxu1 %v7869_v32  ;;  %v7898_v32 = vld [vmem:[%s8185_s6 + $0x60] sm:$0xff]   ;;  %v7900_v34 = vld [vmem:[%s8185_s6 + $0x68] sm:$0xff]  }
  0xa1   : > { %7736 = vmatprep.subr.msk.bf16.mxu1 %vm371_vm1, %v7871_v35  ;;  %v7925_v35 = vld [vmem:[%s9631_s1 + $0x130] ss:$0 sps:$4 sm:$0x33]  }
  0xa4   : > { %6948 = vmatpush3.bf16.msra.mxu1 %v1304_v37  ;;  %v8630_v37 = vld [vmem:[%s9631_s1 + $0x134] sm:$0xff]  }
  0xa5   : > { %6981 = vmatprep.subr.bf16.mxu1 %v8481_v38 }
  0xa6   : > { %6918 = vmatmul.mubr.msk.bf16.gmra.mrb[8].mxu1 %vm322_vm0, %v7843_v36  ;;  %v3999_v36 = vsel %vm371_vm1, %v7925_v35, 0 }
  0xa7   : > { %7134 = vmatmul.mubr.msk.bf16.gmra.mrb[24].mxu0 %vm322_vm0, %v7844_v39  ;;  %6921 = vmatprep.mubr.msk.bf16.mxu1 %vm322_vm0, %v7846_v40  ;;  %v7903_v39 = vld [vmem:[%s8185_s6 + $0x70] sm:$0xff]   ;;  %v7906_v40 = vld [vmem:[%s8185_s6 + $0x88] sm:$0xff]  }
  0xa8   : > { %7137 = vmatprep.mubr.msk.bf16.mxu0 %vm322_vm0, %v7847_v41  ;;  %v7907_v41 = vld [vmem:[%s8185_s6 + $0x78] sm:$0xff]  }
  0xae   : > { %6922 = vmatmul.mubr.msk.bf16.gmra.mrb[12].mxu1 %vm322_vm0, %v7848_v42  ;;  %v7908_v42 = vld [vmem:[%s8185_s6 + $0x90] sm:$0xff]  }
  0xaf   : > { %7138 = vmatmul.mubr.msk.bf16.gmra.mrb[28].mxu0 %vm322_vm0, %v7849_v43  ;;  %6925 = vmatprep.mubr.msk.bf16.mxu1 %vm322_vm0, %v7850_v44  ;;  %v7910_v43 = vld [vmem:[%s8185_s6 + $0x80] sm:$0xff]  }
  0xb0   : > { %7149 = vmatprep.mubr.msk.bf16.mxu0 %vm322_vm0, %v7851_v45  ;;  %v7912_v44 = vld [vmem:[%s8185_s6 + $0x20] sm:$0xff]   ;;  %v7913_v45 = vld [vmem:[%s8185_s6 + $0x88] sm:$0xff]  }
  0xb6   : > { %6926 = vmatmul.mubr.msk.bf16.gmra.mrb[16].mxu1 %vm322_vm0, %v7852_v46  ;;  %v7914_v46 = vld [vmem:[%s8185_s6 + $0x28] sm:$0xff]  }
  0xb7   : > { %7150 = vmatmul.mubr.msk.bf16.vlgmr.msra.gmra.mrb[0].mxu0 %vm322_vm0, %v7853_v47  ;;  %6929 = vmatprep.mubr.msk.bf16.mxu1 %vm322_vm0, %v7855_v48  ;;  %v7915_v47 = vld [vmem:[%s8185_s6 + $0x90] sm:$0xff]  }
  0xb8   : > { %7182 = vmatpush3.bf16.msra.mxu0 %v8431_v19  ;;  %7153 = vmatprep.mubr.msk.bf16.mxu0 %vm322_vm0, %v7856_v49  ;;  %v7887_v19 = vld [vmem:[%s8185_s6 + $0xb0] sm:$0xff]   ;;  %v7918_v49 = vld [vmem:[%s8185_s6 + $0x98] sm:$0xff]  }
  0xb9   : > { %7183 = vmatprep.subr.bf16.mxu0 %v7864_v50  ;;  %v7917_v48 = vld [vmem:[%s8185_s6 + $0x30] sm:$0xff]  }
  0xbc   : > { %7184 = vmatpush3.bf16.msra.mxu0 %v7864_v50  ;;  %v8115_v50 = vld [vmem:[%s9631_s1 + $0x94] sm:$0xff]  }
  0xbd   : > { %7185 = vmatprep.subr.bf16.mxu0 %v7876_v52 }
  0xbe   : > { %6930 = vmatmul.mubr.msk.bf16.gmra.mrb[20].mxu1 %vm322_vm0, %v7857_v51  ;;  %v7919_v51 = vld [vmem:[%s8185_s6 + $0x38] sm:$0xff]  }
  0xbf   : > { %7154 = vmatmul.mubr.msk.bf16.gmra.mrb[4].mxu0 %vm322_vm0, %v7858_v53  ;;  %6933 = vmatprep.mubr.msk.bf16.mxu1 %vm322_vm0, %v7859_v54  ;;  %v7921_v53 = vld [vmem:[%s8185_s6 + $0x40] sm:$0xff]   ;;  %v7922_v54 = vld [vmem:[%s8185_s6 + $0xa8] sm:$0xff]  }
  0xc0   : > { %7157 = vmatprep.mubr.msk.bf16.mxu0 %vm322_vm0, %v7860_v55  ;;  %7186 = vmatpush3.bf16.msra.mxu0 %v7876_v52  ;;  %v7920_v52 = vld [vmem:[%s8185_s6 + $0xa0] sm:$0xff]  }
  0xc1   : > { %7743 = vmatprep.subr.msk.bf16.mxu0 %vm371_vm1, %v7885_v56  ;;  %v8116_v55 = vld [vmem:[%s9631_s1 + $0x9c] sm:$0xff]   ;;  %v8117_v56 = vld [vmem:[%s9631_s1 + $0xa4] ss:$0 sps:$4 sm:$0x33]  }
  0xc4   : > { %7188 = vmatpush3.bf16.msra.mxu0 %v3614_v58  ;;  %v7924_v58 = vld [vmem:[%s8185_s6 + $0xb0] sm:$0xff]  }
  0xc5   : > { %7221 = vmatprep.subr.bf16.mxu0 %v8530_v59 }
  0xc6   : > { %6934 = vmatmul.mubr.msk.bf16.gmra.mrb[24].mxu1 %vm322_vm0, %v7861_v57  ;;  %v7923_v57 = vld [vmem:[%s8185_s6 + $0x48] sm:$0xff]  }
  0xc7   : > { %7158 = vmatmul.mubr.msk.bf16.gmra.mrb[8].mxu0 %vm322_vm0, %v7863_v60  ;;  %6937 = vmatprep.mubr.msk.bf16.mxu1 %vm322_vm0, %v7866_v61  ;;  %v7927_v60 = vld [vmem:[%s8185_s6 + $0xb8] sm:$0xff]  }
  0xc8   : > { %7161 = vmatprep.mubr.msk.bf16.mxu0 %vm322_vm0, %v7867_v62  ;;  %v7928_v61 = vld [vmem:[%s8185_s6 + $0x58] sm:$0xff]   ;;  %v7929_v62 = vld [vmem:[%s8185_s6 + $0xc0] sm:$0xff]  }
  0xce   : > { %6938 = vmatmul.mubr.msk.bf16.gmra.mrb[28].mxu1 %vm322_vm0, %v7868_v63  ;;  %v7930_v63 = vld [vmem:[%s8185_s6 + $0x60] sm:$0xff]  }
  0xcf   : > { %7162 = vmatmul.mubr.msk.bf16.gmra.mrb[12].mxu0 %vm322_vm0, %v7870_v0  ;;  %6949 = vmatprep.mubr.msk.bf16.mxu1 %vm322_vm0, %v7872_v1  ;;  %v7931_v0 = vld [vmem:[%s8185_s6 + $0x50] sm:$0xff]   ;;  %v7933_v1 = vld [vmem:[%s8185_s6 + $0x58] sm:$0xff]  }
  0xd0   : > { %7165 = vmatprep.mubr.msk.bf16.mxu0 %vm322_vm0, %v7873_v2  ;;  %v7935_v2 = vld [vmem:[%s8185_s6 + $0x70] sm:$0xff]  }
  0xd6   : > { %6950 = vmatmul.mubr.msk.bf16.vlgmr.msra.gmra.mrb[0].mxu1 %vm322_vm0, %v7874_v3  ;;  %v7936_v3 = vld [vmem:[%s8185_s6 + $0x60] sm:$0xff]  }
  0xd7   : > { %7166 = vmatmul.mubr.msk.bf16.gmra.mrb[16].mxu0 %vm322_vm0, %v7875_v4  ;;  %6953 = vmatprep.mubr.msk.bf16.mxu1 %vm322_vm0, %v7877_v5  ;;  %v7943_v4 = vld [vmem:[%s9631_s1 + $0x13c] sm:$0xff]   ;;  %v7952_v5 = vld [vmem:[%s9631_s1 + $0x144] sm:$0xff]  }
  0xd8   : > { %7169 = vmatprep.mubr.msk.bf16.mxu0 %vm322_vm0, %v7878_v6  ;;  %6982 = vmatpush3.bf16.msra.mxu1 %v8481_v38  ;;  %v7901_v38 = vld [vmem:[%s8185_s6 + $0x80] sm:$0xff]   ;;  %v7937_v6 = vld [vmem:[%s8185_s6 + $0x78] sm:$0xff]  }
  0xd9   : > { %6983 = vmatprep.subr.bf16.mxu1 %v7905_v7 }
  0xdc   : > { %6984 = vmatpush3.bf16.msra.mxu1 %v7905_v7  ;;  %v7938_v7 = vld [vmem:[%s8185_s6 + $0x68] sm:$0xff]  }
  0xdd   : > { %6985 = vmatprep.subr.bf16.mxu1 %v7909_v9 }
  0xde   : > { %6954 = vmatmul.mubr.msk.bf16.gmra.mrb[4].mxu1 %vm322_vm0, %v7879_v8  ;;  %v7939_v8 = vld [vmem:[%s8185_s6 + $0x80] sm:$0xff]  }
  0xdf   : > { %7170 = vmatmul.mubr.msk.bf16.gmra.mrb[20].mxu0 %vm322_vm0, %v7880_v10  ;;  %6957 = vmatprep.mubr.msk.bf16.mxu1 %vm322_vm0, %v7881_v11  ;;  %v7961_v10 = vld [vmem:[%s9631_s1 + $0x14c] ss:$0 sps:$4 sm:$0x33]  }
  0xe0   : > { %7173 = vmatprep.mubr.msk.bf16.mxu0 %vm322_vm0, %v7882_v13  ;;  %6986 = vmatpush3.bf16.msra.mxu1 %v7909_v9  ;;  %v7940_v9 = vld [vmem:[%s8185_s6 + $0x70] sm:$0xff]   ;;  %v4384_v11 = vsel %vm371_vm1, %v7961_v10, 0 }
  0xe1   : > { %7737 = vmatprep.subr.msk.bf16.mxu1 %vm371_vm1, %v7911_v14  ;;  %v7968_v13 = vld [vmem:[%s9631_s1 + $0x150] sm:$0xff]   ;;  %v7941_v14 = vld [vmem:[%s8185_s6 + $0x88] sm:$0xff]  }
  0xe4   : > { %6988 = vmatpush3.bf16.msra.mxu1 %v1689_v16  ;;  %v7944_v16 = vld [vmem:[%s8185_s6 + $0x90] sm:$0xff]  }
  0xe5   : > { %7341 = vmatprep.subr.bf16.mxu1 %v8584_v20 }
  0xe6   : > { %6958 = vmatmul.mubr.msk.bf16.gmra.mrb[8].mxu1 %vm322_vm0, %v7883_v15  ;;  %v7942_v15 = vld [vmem:[%s8185_s6 + $0x78] sm:$0xff]  }
  0xe7   : > { %7174 = vmatmul.mubr.msk.bf16.gmra.mrb[24].mxu0 %vm322_vm0, %v7884_v17  ;;  %6961 = vmatprep.mubr.msk.bf16.mxu1 %vm322_vm0, %v7886_v18  ;;  %v7945_v17 = vld [vmem:[%s8185_s6 + $0x80] sm:$0xff]   ;;  %v7946_v18 = vld [vmem:[%s8185_s6 + $0x98] sm:$0xff]  }
  0xe8   : > { %7177 = vmatprep.mubr.msk.bf16.mxu0 %vm322_vm0, %v7887_v19  ;;  %v7947_v19 = vld [vmem:[%s8185_s6 + $0x88] sm:$0xff]  }
  0xee   : > { %6962 = vmatmul.mubr.msk.bf16.gmra.mrb[12].mxu1 %vm322_vm0, %v7888_v21  ;;  %v7949_v21 = vld [vmem:[%s8185_s6 + $0x90] sm:$0xff]  }
  0xef   : > { %7178 = vmatmul.mubr.msk.bf16.gmra.mrb[28].mxu0 %vm322_vm0, %v7889_v22  ;;  %6965 = vmatprep.mubr.msk.bf16.mxu1 %vm322_vm0, %v7890_v23  ;;  %v7950_v22 = vld [vmem:[%s8185_s6 + $0x70] sm:$0xff]   ;;  %v7951_v23 = vld [vmem:[%s8185_s6 + $0x98] sm:$0xff]  }
  0xf0   : > { %7189 = vmatprep.mubr.msk.bf16.mxu0 %vm322_vm0, %v7891_v24  ;;  %v7953_v24 = vld [vmem:[%s8185_s6 + $0x78] sm:$0xff]  }
  0xf6   : > { %6966 = vmatmul.mubr.msk.bf16.gmra.mrb[16].mxu1 %vm322_vm0, %v7892_v25  ;;  %v7954_v25 = vld [vmem:[%s8185_s6 + $0xa0] sm:$0xff]  }
  0xf7   : > { %7190 = vmatmul.mubr.msk.bf16.vlgmr.msra.gmra.mrb[0].mxu0 %vm322_vm0, %v7893_v26  ;;  %6969 = vmatprep.mubr.msk.bf16.mxu1 %vm322_vm0, %v7895_v27  ;;  %v7955_v26 = vld [vmem:[%s8185_s6 + $0x80] sm:$0xff]   ;;  %v7956_v27 = vld [vmem:[%s8185_s6 + $0xa8] sm:$0xff]  }
  0xf8   : > { %7222 = vmatpush3.bf16.msra.mxu0 %v8530_v59  ;;  %7193 = vmatprep.mubr.msk.bf16.mxu0 %vm322_vm0, %v7896_v28  ;;  %v7926_v59 = vld [vmem:[%s8185_s6 + $0x50] sm:$0xff]   ;;  %v7957_v28 = vld [vmem:[%s8185_s6 + $0x88] sm:$0xff]  }
  0xf9   : > { %7223 = vmatprep.subr.bf16.mxu0 %v7904_v29 }
  0xfc   : > { %7224 = vmatpush3.bf16.msra.mxu0 %v7904_v29  ;;  %v7958_v29 = vld [vmem:[%s8185_s6 + $0xb0] sm:$0xff]  }
  0xfd   : > { %7225 = vmatprep.subr.bf16.mxu0 %v7916_v30 }
  0xfe   : > { %6970 = vmatmul.mubr.msk.bf16.gmra.mrb[20].mxu1 %vm322_vm0, %v7897_v31  ;;  %v7960_v31 = vld [vmem:[%s8185_s6 + $0xb8] sm:$0xff]  }
  0xff   : > { %7194 = vmatmul.mubr.msk.bf16.gmra.mrb[4].mxu0 %vm322_vm0, %v7898_v32  ;;  %6973 = vmatprep.mubr.msk.bf16.mxu1 %vm322_vm0, %v7899_v33  ;;  %v7962_v32 = vld [vmem:[%s8185_s6 + $0x98] sm:$0xff]   ;;  %v7963_v33 = vld [vmem:[%s8185_s6 + $0xc0] sm:$0xff]  }
 0x100   : > { %7197 = vmatprep.mubr.msk.bf16.mxu0 %vm322_vm0, %v7900_v34  ;;  %7226 = vmatpush3.bf16.msra.mxu0 %v7916_v30  ;;  %v7959_v30 = vld [vmem:[%s8185_s6 + $0x90] sm:$0xff]   ;;  %v7964_v34 = vld [vmem:[%s8185_s6 + $0xa0] sm:$0xff]  }
 0x101   : > { %7744 = vmatprep.subr.msk.bf16.mxu0 %vm371_vm1, %v7925_v35  ;;  %v7965_v35 = vld [vmem:[%s8185_s6 + $0xc8] sm:$0xff]  }
 0x104   : > { %7228 = vmatpush3.bf16.msra.mxu0 %v3999_v36  ;;  %v7966_v36 = vld [vmem:[%s8185_s6 + $0x58] sm:$0xff]  }
 0x105   : > { %7261 = vmatprep.subr.bf16.mxu0 %v8630_v37 }
 0x106   : > { %6974 = vmatmul.mubr.msk.bf16.gmra.mrb[24].mxu1 %vm322_vm0, %v7901_v38  ;;  %v7969_v38 = vld [vmem:[%s8185_s6 + $0x68] sm:$0xff]  }
 0x107   : > { %7198 = vmatmul.mubr.msk.bf16.gmra.mrb[8].mxu0 %vm322_vm0, %v7903_v39  ;;  %6977 = vmatprep.mubr.msk.bf16.mxu1 %vm322_vm0, %v7906_v40  ;;  %v7973_v39 = vld [vmem:[%s9631_s1 + $0x158] sm:$0xff]   ;;  %v7978_v40 = vld [vmem:[%s9631_s1 + $0x160] sm:$0xff]  }
 0x108   : > { %7201 = vmatprep.mubr.msk.bf16.mxu0 %vm322_vm0, %v7907_v41  ;;  %v7970_v41 = vld [vmem:[%s8185_s6 + $0x70] sm:$0xff]  }
 0x10e   : > { %6978 = vmatmul.mubr.msk.bf16.gmra.mrb[28].mxu1 %vm322_vm0, %v7908_v42  ;;  %v7971_v42 = vld [vmem:[%s8185_s6 + $0x78] sm:$0xff]  }
 0x10f   : > { %7202 = vmatmul.mubr.msk.bf16.gmra.mrb[12].mxu0 %vm322_vm0, %v7910_v43  ;;  %6989 = vmatprep.mubr.msk.bf16.mxu1 %vm322_vm0, %v7912_v44  ;;  %v7983_v43 = vld [vmem:[%s9631_s1 + $0x168] ss:$0 sps:$4 sm:$0x33]  }
 0x110   : > { %7205 = vmatprep.mubr.msk.bf16.mxu0 %vm322_vm0, %v7913_v45  ;;  %v4769_v44 = vsel %vm371_vm1, %v7983_v43, 0  ;;  %v7972_v45 = vld [vmem:[%s8185_s6 + $0x80] sm:$0xff]  }
 0x116   : > { %6990 = vmatmul.mubr.msk.bf16.vlgmr.msra.gmra.mrb[0].mxu1 %vm322_vm0, %v7914_v46  ;;  %v7974_v46 = vld [vmem:[%s8185_s6 + $0x88] sm:$0xff]  }
 0x117   : > { %7206 = vmatmul.mubr.msk.bf16.gmra.mrb[16].mxu0 %vm322_vm0, %v7915_v47  ;;  %6993 = vmatprep.mubr.msk.bf16.mxu1 %vm322_vm0, %v7917_v48  ;;  %v7975_v47 = vld [vmem:[%s8185_s6 + $0x90] sm:$0xff]   ;;  %v7976_v48 = vld [vmem:[%s8185_s6 + $0x98] sm:$0xff]  }
 0x118   : > { %7209 = vmatprep.mubr.msk.bf16.mxu0 %vm322_vm0, %v7918_v49  ;;  %7345 = vmatpush3.bf16.msra.mxu1 %v8584_v20  ;;  %v7948_v20 = vld [vmem:[%s8185_s6 + $0x68] sm:$0xff]   ;;  %v7977_v49 = vld [vmem:[%s8185_s6 + $0xa0] sm:$0xff]  }
 0x119   : > { %7342 = vmatprep.subr.bf16.mxu1 %v8115_v50 }
 0x11c   : > { %7346 = vmatpush3.bf16.msra.mxu1 %v8115_v50  ;;  %v7979_v50 = vld [vmem:[%s8185_s6 + $0xa8] sm:$0xff]  }
 0x11d   : > { %7343 = vmatprep.subr.bf16.mxu1 %v8116_v55 }
 0x11e   : > { %6994 = vmatmul.mubr.msk.bf16.gmra.mrb[4].mxu1 %vm322_vm0, %v7919_v51  ;;  %v7980_v51 = vld [vmem:[%s8185_s6 + $0xb0] sm:$0xff]  }
 0x11f   : > { %7210 = vmatmul.mubr.msk.bf16.gmra.mrb[20].mxu0 %vm322_vm0, %v7920_v52  ;;  %6997 = vmatprep.mubr.msk.bf16.mxu1 %vm322_vm0, %v7921_v53  ;;  %v7981_v52 = vld [vmem:[%s8185_s6 + $0xb8] sm:$0xff]   ;;  %v7982_v53 = vld [vmem:[%s8185_s6 + $0xc0] sm:$0xff]  }
 0x120   : > { %7213 = vmatprep.mubr.msk.bf16.mxu0 %vm322_vm0, %v7922_v54  ;;  %7347 = vmatpush3.bf16.msra.mxu1 %v8116_v55  ;;  %v7984_v54 = vld [vmem:[%s8185_s6 + $0xc8] sm:$0xff]   ;;  %v7985_v55 = vld [vmem:[%s8185_s6 + $0xd0] sm:$0xff]  }
 0x121   : > { %7739 = vmatprep.subr.msk.bf16.mxu1 %vm371_vm1, %v8117_v56  ;;  %v7986_v56 = vld [vmem:[%s8185_s6 + $0x60] sm:$0xff]  }
 0x124   : > { %7348 = vmatpush3.bf16.msra.mxu1 %v8201_v12  ;;  %v7932_v12 = vld [vmem:[%s8185_s6 + $0x68] sm:$0xff]  }
 0x126   : > { %6998 = vmatmul.mubr.msk.bf16.gmra.mrb[8].mxu1 %vm322_vm0, %v7923_v57  ;;  %v7987_v57 = vld [vmem:[%s8185_s6 + $0x68] sm:$0xff]  }
 0x127   : > { %7214 = vmatmul.mubr.msk.bf16.gmra.mrb[24].mxu0 %vm322_vm0, %v7924_v58  ;;  %7001 = vmatprep.mubr.msk.bf16.mxu1 %vm322_vm0, %v7926_v59  ;;  %v7988_v58 = vld [vmem:[%s8185_s6 + $0x70] sm:$0xff]   ;;  %v7989_v59 = vld [vmem:[%s8185_s6 + $0x78] sm:$0xff]  }
 0x128   : > { %7217 = vmatprep.mubr.msk.bf16.mxu0 %vm322_vm0, %v7927_v60  ;;  %v7990_v60 = vld [vmem:[%s8185_s6 + $0x80] sm:$0xff]  }
 0x12e   : > { %7002 = vmatmul.mubr.msk.bf16.gmra.mrb[12].mxu1 %vm322_vm0, %v7928_v61  ;;  %v7991_v61 = vld [vmem:[%s8185_s6 + $0x88] sm:$0xff]  }
 0x12f   : > { %7218 = vmatmul.mubr.msk.bf16.gmra.mrb[28].mxu0 %vm322_vm0, %v7929_v62  ;;  %7005 = vmatprep.mubr.msk.bf16.mxu1 %vm322_vm0, %v7930_v63  ;;  %v7992_v62 = vld [vmem:[%s8185_s6 + $0x90] sm:$0xff]   ;;  %v7993_v63 = vld [vmem:[%s8185_s6 + $0x98] sm:$0xff]  }
 0x130   : > { %7229 = vmatprep.mubr.msk.bf16.mxu0 %vm322_vm0, %v7931_v0  ;;  %v7994_v0 = vld [vmem:[%s8185_s6 + $0xa0] sm:$0xff]  }
 0x136   : > { %7006 = vmatmul.mubr.msk.bf16.gmra.mrb[16].mxu1 %vm322_vm0, %v7932_v12  ;;  %v7995_v12 = vld [vmem:[%s8185_s6 + $0xa8] sm:$0xff]  }
 0x137   : > { %7230 = vmatmul.mubr.msk.bf16.vlgmr.msra.gmra.mrb[0].mxu0 %vm322_vm0, %v7933_v1  ;;  %7009 = vmatprep.mubr.msk.bf16.mxu1 %vm322_vm0, %v7935_v2  ;;  %v7996_v1 = vld [vmem:[%s8185_s6 + $0xb0] sm:$0xff]   ;;  %v7997_v2 = vld [vmem:[%s8185_s6 + $0xb8] sm:$0xff]  }
 0x138   : > { %7262 = vmatpush3.bf16.msra.mxu0 %v8630_v37  ;;  %7233 = vmatprep.mubr.msk.bf16.mxu0 %vm322_vm0, %v7936_v3  ;;  %v7967_v37 = vld [vmem:[%s8185_s6 + $0x60] sm:$0xff]  }
 0x139   : > { %7263 = vmatprep.subr.bf16.mxu0 %v7943_v4  ;;  %v7998_v3 = vld [vmem:[%s8185_s6 + $0xc0] sm:$0xff]  }
 0x13c   : > { %7264 = vmatpush3.bf16.msra.mxu0 %v7943_v4  ;;  %v7999_v4 = vld [vmem:[%s8185_s6 + $0xc8] sm:$0xff]  }
 0x13d   : > { %7265 = vmatprep.subr.bf16.mxu0 %v7952_v5 }
 0x13e   : > { %7010 = vmatmul.mubr.msk.bf16.gmra.mrb[20].mxu1 %vm322_vm0, %v7937_v6 }
 0x13f   : > { %7234 = vmatmul.mubr.msk.bf16.gmra.mrb[4].mxu0 %vm322_vm0, %v7938_v7  ;;  %7013 = vmatprep.mubr.msk.bf16.mxu1 %vm322_vm0, %v7939_v8 }
 0x140   : > { %7237 = vmatprep.mubr.msk.bf16.mxu0 %vm322_vm0, %v7940_v9  ;;  %7266 = vmatpush3.bf16.msra.mxu0 %v7952_v5  ;;  %v8000_v5 = vld [vmem:[%s8185_s6 + $0xd0] sm:$0xff]   ;;  %v8001_v9 = vld [vmem:[%s8185_s6 + $0xd8] sm:$0xff]   ;;  %s8126_s6 = smov 112  }
 0x141   : > { %7745 = vmatprep.subr.msk.bf16.mxu0 %vm371_vm1, %v7961_v10 }
 0x144   : > { %7268 = vmatpush3.bf16.msra.mxu0 %v4384_v11 }
 0x145   : > { %7301 = vmatprep.subr.bf16.mxu0 %v7968_v13 }
 0x146   : > { %7014 = vmatmul.mubr.msk.bf16.gmra.mrb[24].mxu1 %vm322_vm0, %v7941_v14 }
 0x147   : > { %7238 = vmatmul.mubr.msk.bf16.gmra.mrb[8].mxu0 %vm322_vm0, %v7942_v15  ;;  %7017 = vmatprep.mubr.msk.bf16.mxu1 %vm322_vm0, %v7944_v16 }
 0x148   : > { %7241 = vmatprep.mubr.msk.bf16.mxu0 %vm322_vm0, %v7945_v17 }
 0x14e   : > { %7018 = vmatmul.mubr.msk.bf16.gmra.mrb[28].mxu1 %vm322_vm0, %v7946_v18 }
 0x14f   : > { %7242 = vmatmul.mubr.msk.bf16.gmra.mrb[12].mxu0 %vm322_vm0, %v7947_v19  ;;  %7045 = vmatprep.mubr.msk.bf16.mxu1 %vm322_vm0, %v7948_v20 }
 0x150   : > { %7245 = vmatprep.mubr.msk.bf16.mxu0 %vm322_vm0, %v7949_v21 }
 0x156   : > { %7046 = vmatmul.mubr.msk.bf16.vlgmr.msra.gmra.mrb[16].mxu1 %vm322_vm0, %v7950_v22 }
 0x157   : > { %7246 = vmatmul.mubr.msk.bf16.gmra.mrb[16].mxu0 %vm322_vm0, %v7951_v23  ;;  %7049 = vmatprep.mubr.msk.bf16.mxu1 %vm322_vm0, %v7953_v24 }
 0x158   : > { %7249 = vmatprep.mubr.msk.bf16.mxu0 %vm322_vm0, %v7954_v25 }
 0x15e   : > { %7050 = vmatmul.mubr.msk.bf16.gmra.mrb[20].mxu1 %vm322_vm0, %v7955_v26 }
 0x15f   : > { %7250 = vmatmul.mubr.msk.bf16.gmra.mrb[20].mxu0 %vm322_vm0, %v7956_v27  ;;  %7053 = vmatprep.mubr.msk.bf16.mxu1 %vm322_vm0, %v7957_v28 }
 0x160   : > { %7253 = vmatprep.mubr.msk.bf16.mxu0 %vm322_vm0, %v7958_v29 }
 0x166   : > { %7054 = vmatmul.mubr.msk.bf16.gmra.mrb[24].mxu1 %vm322_vm0, %v7959_v30 }
 0x167   : > { %7254 = vmatmul.mubr.msk.bf16.gmra.mrb[24].mxu0 %vm322_vm0, %v7960_v31  ;;  %7057 = vmatprep.mubr.msk.bf16.mxu1 %vm322_vm0, %v7962_v32 }
 0x168   : > { %7257 = vmatprep.mubr.msk.bf16.mxu0 %vm322_vm0, %v7963_v33 }
 0x16e   : > { %7058 = vmatmul.mubr.msk.bf16.gmra.mrb[28].mxu1 %vm322_vm0, %v7964_v34 }
 0x16f   : > { %7258 = vmatmul.mubr.msk.bf16.gmra.mrb[28].mxu0 %vm322_vm0, %v7965_v35 }
 0x170   : > { %7269 = vmatprep.mubr.msk.bf16.mxu0 %vm322_vm0, %v7966_v36 }
 0x177   : > { %7270 = vmatmul.mubr.msk.bf16.vlgmr.msra.gmra.mrb[0].mxu0 %vm322_vm0, %v7967_v37 }
 0x178   : > { %7302 = vmatpush3.bf16.msra.mxu0 %v7968_v13  ;;  %7273 = vmatprep.mubr.msk.bf16.mxu0 %vm322_vm0, %v7969_v38 }
 0x179   : > { %7303 = vmatprep.subr.bf16.mxu0 %v7973_v39 }
 0x17c   : > { %7304 = vmatpush3.bf16.msra.mxu0 %v7973_v39 }
 0x17d   : > { %7305 = vmatprep.subr.bf16.mxu0 %v7978_v40 }
 0x17f   : > { %7274 = vmatmul.mubr.msk.bf16.gmra.mrb[4].mxu0 %vm322_vm0, %v7970_v41 }
 0x180   : > { %7277 = vmatprep.mubr.msk.bf16.mxu0 %vm322_vm0, %v7971_v42  ;;  %7306 = vmatpush3.bf16.msra.mxu0 %v7978_v40 }
 0x181   : > { %7746 = vmatprep.subr.msk.bf16.mxu0 %vm371_vm1, %v7983_v43 }
 0x184   : > { %7308 = vmatpush3.bf16.msra.mxu0 %v4769_v44 }
 0x187   : > { %7278 = vmatmul.mubr.msk.bf16.gmra.mrb[8].mxu0 %vm322_vm0, %v7972_v45 }
 0x188   : > { %7281 = vmatprep.mubr.msk.bf16.mxu0 %vm322_vm0, %v7974_v46 }
 0x18f   : > { %7282 = vmatmul.mubr.msk.bf16.gmra.mrb[12].mxu0 %vm322_vm0, %v7975_v47 }
 0x190   : > { %7285 = vmatprep.mubr.msk.bf16.mxu0 %vm322_vm0, %v7976_v48 }
 0x197   : > { %7286 = vmatmul.mubr.msk.bf16.gmra.mrb[16].mxu0 %vm322_vm0, %v7977_v49 }
 0x198   : > { %7289 = vmatprep.mubr.msk.bf16.mxu0 %vm322_vm0, %v7979_v50 }
 0x19f   : > { %7290 = vmatmul.mubr.msk.bf16.gmra.mrb[20].mxu0 %vm322_vm0, %v7980_v51 }
 0x1a0   : > { %7293 = vmatprep.mubr.msk.bf16.mxu0 %vm322_vm0, %v7981_v52 }
 0x1a7   : > { %7294 = vmatmul.mubr.msk.bf16.gmra.mrb[24].mxu0 %vm322_vm0, %v7982_v53 }
 0x1a8   : > { %7297 = vmatprep.mubr.msk.bf16.mxu0 %vm322_vm0, %v7984_v54 }
 0x1af   : > { %7298 = vmatmul.mubr.msk.bf16.gmra.mrb[28].mxu0 %vm322_vm0, %v7985_v55 }
 0x1b0   : > { %7309 = vmatprep.mubr.msk.bf16.mxu0 %vm322_vm0, %v7986_v56 }
 0x1b7   : > { %7310 = vmatmul.mubr.msk.bf16.vlgmr.msra.gmra.mrb[0].mxu0 %vm322_vm0, %v7987_v57 }
 0x1b8   : > { %7313 = vmatprep.mubr.msk.bf16.mxu0 %vm322_vm0, %v7988_v58 }
 0x1bf   : > { %7314 = vmatmul.mubr.msk.bf16.gmra.mrb[4].mxu0 %vm322_vm0, %v7989_v59 }
 0x1c0   : > { %7317 = vmatprep.mubr.msk.bf16.mxu0 %vm322_vm0, %v7990_v60 }
 0x1c7   : > { %7318 = vmatmul.mubr.msk.bf16.gmra.mrb[8].mxu0 %vm322_vm0, %v7991_v61 }
 0x1c8   : > { %7321 = vmatprep.mubr.msk.bf16.mxu0 %vm322_vm0, %v7992_v62 }
 0x1cf   : > { %7322 = vmatmul.mubr.msk.bf16.gmra.mrb[12].mxu0 %vm322_vm0, %v7993_v63 }
 0x1d0   : > { %7325 = vmatprep.mubr.msk.bf16.mxu0 %vm322_vm0, %v7994_v0 }
 0x1d7   : > { %7326 = vmatmul.mubr.msk.bf16.gmra.mrb[16].mxu0 %vm322_vm0, %v7995_v12 }
 0x1d8   : > { %7329 = vmatprep.mubr.msk.bf16.mxu0 %vm322_vm0, %v7996_v1 }
 0x1df   : > { %7330 = vmatmul.mubr.msk.bf16.gmra.mrb[20].mxu0 %vm322_vm0, %v7997_v2 }
 0x1e0   : > { %7333 = vmatprep.mubr.msk.bf16.mxu0 %vm322_vm0, %v7998_v3 }
 0x1e7   : > { %7334 = vmatmul.mubr.msk.bf16.gmra.mrb[24].mxu0 %vm322_vm0, %v7999_v4 }
 0x1e8   : > { %7337 = vmatprep.mubr.msk.bf16.mxu0 %vm322_vm0, %v8000_v5 }
 0x1e9   : > { %v6991_v6 = vpop.f32.mrb[0].mxu1 }
 0x1ea   : > { %v1725_v7 = vpop.f32.mrb[1].mxu1 }
 0x1eb   : > { %v6992_v8 = vpop.f32.mrb[2].mxu1 }
 0x1ec   : > { %v1728_v10 = vpop.f32.mrb[3].mxu1 }
 0x1ef   : > { %7338 = vmatmul.mubr.msk.bf16.gmra.mrb[28].mxu0 %vm322_vm0, %v8001_v9 }
 0x1f1   : > { %v6995_v11 = vpop.f32.mrb[4].mxu1 }
 0x1f2   : > { %v1741_v13 = vpop.f32.mrb[5].mxu1 }
 0x1f3   : > { %v6996_v14 = vpop.f32.mrb[6].mxu1 }
 0x1f4   : > { %v1744_v15 = vpop.f32.mrb[7].mxu1 }
 0x1f9   : > { %v6999_v16 = vpop.f32.mrb[8].mxu1 }
 0x1fa   : > { %v1757_v17 = vpop.f32.mrb[9].mxu1 }
 0x1fb   : > { %v7000_v18 = vpop.f32.mrb[10].mxu1 }
 0x1fc   : > { %v1760_v19 = vpop.f32.mrb[11].mxu1 }
 0x201   : > { %v8843_v20 = vpop.f32.mrb[12].mxu1 }
 0x202   : > { %v8845_v21 = vpop.f32.mrb[13].mxu1 }
 0x203   : > { %v8847_v22 = vpop.f32.mrb[14].mxu1 }
 0x204   : > { %v8849_v23 = vpop.f32.mrb[15].mxu1 }
 0x229   : > { %v8851_v24 = vpop.f32.mrb[16].mxu1 }
 0x22a   : > { %v8853_v25 = vpop.f32.mrb[17].mxu1 }
 0x22b   : > { %v8855_v26 = vpop.f32.mrb[18].mxu1 }
 0x22c   : > { %v8857_v27 = vpop.f32.mrb[19].mxu1 }
 0x231   : > { %v8859_v28 = vpop.f32.mrb[20].mxu1 }
 0x232   : > { %v8861_v29 = vpop.f32.mrb[21].mxu1 }
 0x233   : > { %v8863_v30 = vpop.f32.mrb[22].mxu1 }
 0x234   : > { %v8865_v31 = vpop.f32.mrb[23].mxu1 }
 0x239   : > { %v8867_v32 = vpop.f32.mrb[24].mxu1 }
 0x23a   : > { %v8869_v33 = vpop.f32.mrb[25].mxu1 }
 0x23b   : > { %v8871_v34 = vpop.f32.mrb[26].mxu1 }
 0x23c   : > { %v8873_v35 = vpop.f32.mrb[27].mxu1 }
 0x241   : > { %v8875_v36 = vpop.f32.mrb[28].mxu1 }
 0x242   : > { %v8877_v37 = vpop.f32.mrb[29].mxu1 }
 0x243   : > { %v8879_v38 = vpop.f32.mrb[30].mxu1 }
 0x244   : > { %v8881_v39 = vpop.f32.mrb[31].mxu1 }
 0x28a   : > { %v7311_v40 = vpop.f32.mrb[0].mxu0 }
 0x28b   : > { %v7349_v41 = vadd.f32 %v7311_v40, %v6991_v6  ;;  %v4805_v42 = vpop.f32.mrb[1].mxu0 }
 0x28c   : > { %v7350_v43 = vadd.f32 %v4805_v42, %v1725_v7  ;;  %v7312_v44 = vpop.f32.mrb[2].mxu0 }
 0x28d   : > { %v8883_v45 = vmul.f32 %v7349_v41, %v7349_v41  ;;  %v7351_v46 = vadd.f32 %v7312_v44, %v6992_v8  ;;  %v4808_v47 = vpop.f32.mrb[3].mxu0 }
 0x28e   : > { %v8885_v48 = vmul.f32 %v7350_v43, %v7350_v43  ;;  %v7352_v49 = vadd.f32 %v4808_v47, %v1728_v10 }
 0x28f   : > { %5032 = vrot.lane.b32.xlu0 %v8883_v45, %s8126_s6  ;;  %v8891_v50 = vmul.f32 %v7351_v46, %v7351_v46 }
 0x290   : > { %5028 = vrot.lane.b32.xlu1 %v8885_v48, %s8126_s6  ;;  %v8897_v59 = vmul.f32 %v7352_v49, %v7352_v49 }
 0x292   : > { %v7315_v51 = vpop.f32.mrb[4].mxu0 }
 0x293   : > { %v7353_v52 = vadd.f32 %v7315_v51, %v6995_v11  ;;  %v4821_v53 = vpop.f32.mrb[5].mxu0 }
 0x294   : > { %v7354_v54 = vadd.f32 %v4821_v53, %v1741_v13  ;;  %v7316_v55 = vpop.f32.mrb[6].mxu0  ;;  %5034 = vrot.lane.b32.xlu1 %v8891_v50, %s8126_s6 }
 0x295   : > { %v8895_v56 = vmul.f32 %v7353_v52, %v7353_v52  ;;  %v7355_v57 = vadd.f32 %v7316_v55, %v6996_v14  ;;  %v4824_v58 = vpop.f32.mrb[7].mxu0 }
 0x296   : > { %v7356_v60 = vadd.f32 %v4824_v58, %v1744_v15  ;;  %v8903_v61 = vmul.f32 %v7354_v54, %v7354_v54 }
 0x297   : > { %5040 = vrot.lane.b32.xlu0 %v8895_v56, %s8126_s6  ;;  %v8905_v62 = vmul.f32 %v7355_v57, %v7355_v57 }
 0x298   : > { %5030 = vrot.lane.b32.xlu1 %v8897_v59, %s8126_s6  ;;  %v8913_v6 = vmul.f32 %v7356_v60, %v7356_v60 }
 0x29a   : > { %v7319_v63 = vpop.f32.mrb[8].mxu0 }
 0x29b   : > { %v7357_v0 = vadd.f32 %v7319_v63, %v6999_v16  ;;  %v4837_v12 = vpop.f32.mrb[9].mxu0  ;;  %5036 = vrot.lane.b32.xlu0 %v8903_v61, %s8126_s6 }
 0x29c   : > { %v7358_v1 = vadd.f32 %v4837_v12, %v1757_v17  ;;  %v7320_v2 = vpop.f32.mrb[10].mxu0  ;;  %5042 = vrot.lane.b32.xlu1 %v8905_v62, %s8126_s6 }
 0x29d   : > { %v8911_v3 = vmul.f32 %v7357_v0, %v7357_v0  ;;  %v7359_v4 = vadd.f32 %v7320_v2, %v7000_v18  ;;  %v4840_v5 = vpop.f32.mrb[11].mxu0 }
 0x29e   : > { %v7360_v7 = vadd.f32 %v4840_v5, %v1760_v19  ;;  %v8919_v8 = vmul.f32 %v7358_v1, %v7358_v1 }
 0x29f   : > { %5048 = vrot.lane.b32.xlu0 %v8911_v3, %s8126_s6  ;;  %v8921_v9 = vmul.f32 %v7359_v4, %v7359_v4 }
 0x2a0   : > { %5038 = vrot.lane.b32.xlu1 %v8913_v6, %s8126_s6  ;;  %v8936_v18 = vmul.f32 %v7360_v7, %v7360_v7 }
 0x2a2   : > { %v7323_v10 = vpop.f32.mrb[12].mxu0 }
 0x2a3   : > { %v8924_v11 = vadd.f32 %v7323_v10, %v8843_v20  ;;  %v4853_v13 = vpop.f32.mrb[13].mxu0  ;;  %5044 = vrot.lane.b32.xlu0 %v8919_v8, %s8126_s6 }
 0x2a4   : > { %v8929_v14 = vadd.f32 %v4853_v13, %v8845_v21  ;;  %v7324_v15 = vpop.f32.mrb[14].mxu0  ;;  %5050 = vrot.lane.b32.xlu1 %v8921_v9, %s8126_s6 }
 0x2a5   : > { %v8934_v16 = vadd.f32 %v7324_v15, %v8847_v22  ;;  %v4856_v17 = vpop.f32.mrb[15].mxu0 }
 0x2a6   : > { %v7364_v19 = vadd.f32 %v4856_v17, %v8849_v23 }
 0x2a8   : > { %5046 = vrot.lane.b32.xlu1 %v8936_v18, %s8126_s6 }
 0x2aa   : > { %v7327_v20 = vpop.f32.mrb[16].mxu0 }
 0x2ab   : > { %v7365_v40 = vadd.f32 %v7327_v20, %v8851_v24  ;;  %v4869_v21 = vpop.f32.mrb[17].mxu0  ;;  %v9003_v20 = vmul.f32 %v7364_v19, %v7364_v19  ;;  %v9031_v19 = vmul.f32 %v8934_v16, %v8934_v16 }
 0x2ac   : > { %v7366_v41 = vadd.f32 %v4869_v21, %v8853_v25  ;;  %v7328_v42 = vpop.f32.mrb[18].mxu0  ;;  %v8004_v21 = vld [vmem:[%s9632_s2 + $0x4] ss:$8 sps:$4 sm:$0xff]  }
 0x2ad   : > { %v8943_v43 = vmul.f32 %v7365_v40, %v7365_v40  ;;  %v7367_v22 = vadd.f32 %v7328_v42, %v8855_v26  ;;  %v4872_v44 = vpop.f32.mrb[19].mxu0  ;;  %v9037_v40 = vmul.f32 %v8924_v11, %v8924_v11  ;;  %5620 = vmatprep.mubr.bf16.mxu1 %v8004_v21 }
 0x2ae   : > { %v7368_v46 = vadd.f32 %v4872_v44, %v8857_v27  ;;  %v8951_v23 = vmul.f32 %v7366_v41, %v7366_v41 }
 0x2af   : > { %v8947_v47 = vmul.f32 %v7367_v22, %v7367_v22  ;;  %5064 = vrot.lane.b32.xlu0 %v8943_v43, %s8126_s6 }
 0x2b0   : > { %v8959_v51 = vmul.f32 %v7368_v46, %v7368_v46 }
 0x2b1   : > { %5066 = vrot.lane.b32.xlu1 %v8947_v47, %s8126_s6 }
 0x2b2   : > { %v7331_v24 = vpop.f32.mrb[20].mxu0 }
 0x2b3   : > { %v7369_v25 = vadd.f32 %v7331_v24, %v8859_v28  ;;  %v4885_v49 = vpop.f32.mrb[21].mxu0  ;;  %5060 = vrot.lane.b32.xlu0 %v8951_v23, %s8126_s6 }
 0x2b4   : > { %v7370_v26 = vadd.f32 %v4885_v49, %v8861_v29  ;;  %v7332_v27 = vpop.f32.mrb[22].mxu0 }
 0x2b5   : > { %v7371_v52 = vadd.f32 %v7332_v27, %v8863_v30  ;;  %v4888_v53 = vpop.f32.mrb[23].mxu0  ;;  %v8967_v28 = vmul.f32 %v7369_v25, %v7369_v25 }
 0x2b6   : > { %v7372_v54 = vadd.f32 %v4888_v53, %v8865_v31  ;;  %v8977_v63 = vmul.f32 %v7370_v26, %v7370_v26 }
 0x2b7   : > { %v8963_v55 = vmul.f32 %v7371_v52, %v7371_v52  ;;  %5062 = vrot.lane.b32.xlu0 %v8959_v51, %s8126_s6 }
 0x2b8   : > { %v8971_v29 = vmul.f32 %v7372_v54, %v7372_v54 }
 0x2b9   : > { %5074 = vrot.lane.b32.xlu1 %v8963_v55, %s8126_s6 }
 0x2ba   : > { %v7335_v57 = vpop.f32.mrb[24].mxu0 }
 0x2bb   : > { %v7373_v58 = vadd.f32 %v7335_v57, %v8867_v32  ;;  %v4901_v60 = vpop.f32.mrb[25].mxu0  ;;  %5072 = vrot.lane.b32.xlu0 %v8967_v28, %s8126_s6 }
 0x2bc   : > { %v7374_v30 = vadd.f32 %v4901_v60, %v8869_v33  ;;  %v7336_v31 = vpop.f32.mrb[26].mxu0 }
 0x2bd   : > { %v7375_v0 = vadd.f32 %v7336_v31, %v8871_v34  ;;  %v4904_v12 = vpop.f32.mrb[27].mxu0  ;;  %5070 = vrot.lane.b32.xlu1 %v8971_v29, %s8126_s6  ;;  %v8987_v32 = vmul.f32 %v7373_v58, %v7373_v58 }
 0x2be   : > { %v7376_v1 = vadd.f32 %v4904_v12, %v8873_v35  ;;  %v8997_v10 = vmul.f32 %v7374_v30, %v7374_v30 }
 0x2bf   : > { %v8983_v2 = vmul.f32 %v7375_v0, %v7375_v0  ;;  %5068 = vrot.lane.b32.xlu0 %v8977_v63, %s8126_s6 }
 0x2c0   : > { %v8991_v4 = vmul.f32 %v7376_v1, %v7376_v1 }
 0x2c1   : > { %5082 = vrot.lane.b32.xlu1 %v8983_v2, %s8126_s6 }
 0x2c2   : > { %v7339_v33 = vpop.f32.mrb[28].mxu0 }
 0x2c3   : > { %v7377_v34 = vadd.f32 %v7339_v33, %v8875_v36  ;;  %v4917_v5 = vpop.f32.mrb[29].mxu0  ;;  %5080 = vrot.lane.b32.xlu0 %v8987_v32, %s8126_s6  ;;  %v9009_v36 = vmul.f32 %v8929_v14, %v8929_v14 }
 0x2c4   : > { %v7378_v35 = vadd.f32 %v4917_v5, %v8877_v37  ;;  %v7340_v7 = vpop.f32.mrb[30].mxu0 }
 0x2c5   : > { %v7379_v13 = vadd.f32 %v7340_v7, %v8879_v38  ;;  %v4920_v15 = vpop.f32.mrb[31].mxu0  ;;  %5078 = vrot.lane.b32.xlu1 %v8991_v4, %s8126_s6  ;;  %v9025_v14 = vmul.f32 %v7377_v34, %v7377_v34 }
 0x2c6   : > { %v7380_v17 = vadd.f32 %v4920_v15, %v8881_v39  ;;  %v9017_v38 = vmul.f32 %v7378_v35, %v7378_v35 }
 0x2c7   : > { %5076 = vrot.lane.b32.xlu0 %v8997_v10, %s8126_s6  ;;  %v9021_v39 = vmul.f32 %v7379_v13, %v7379_v13 }
 0x2c8   : > { %v9013_v37 = vmul.f32 %v7380_v17, %v7380_v17 }
 0x2c9   : > { %5054 = vrot.lane.b32.xlu1 %v9003_v20, %s8126_s6 }
 0x2cb   : > { %5052 = vrot.lane.b32.xlu0 %v9009_v36, %s8126_s6 }
 0x2cd   : > { %5086 = vrot.lane.b32.xlu1 %v9013_v37, %s8126_s6 }
 0x2cf   : > { %5084 = vrot.lane.b32.xlu0 %v9017_v38, %s8126_s6 }
 0x2d1   : > { %5090 = vrot.lane.b32.xlu1 %v9021_v39, %s8126_s6 }
 0x2d3   : > { %5088 = vrot.lane.b32.xlu0 %v9025_v14, %s8126_s6 }
 0x2d5   : > { %5058 = vrot.lane.b32.xlu1 %v9031_v19, %s8126_s6 }
 0x2d7   : > { %5056 = vrot.lane.b32.xlu0 %v9037_v40, %s8126_s6 }
 0x301   : > { %v5033_v41 = vpop.permute.xlu0 %5032 }
 0x302   : > { %v5029_v16 = vpop.permute.xlu1 %5028  ;;  %v9047_v46 = vadd.f32 %v5033_v41, %v8883_v45 }
 0x303   : > { %v9050_v11 = vadd.f32 %v5029_v16, %v8885_v48 }
 0x304   : > { %8050 = vrsqrt.f32 %v9047_v46  ;;  %vm5172_vm2 = vcmp.eq.f32.partialorder %v9047_v46, inf  ;;  %vm5174_vm4 = vcmp.eq.f32.partialorder %v9047_v46, 0.0  ;;  %v5175_v30 = vand.u32 2147483648, %v9047_v46 }
 0x305   : > { %8052 = vrsqrt.f32 %v9050_v11  ;;  %vm5158_vm3 = vcmp.eq.f32.partialorder %v9050_v11, inf  ;;  %vm5160_vm5 = vcmp.eq.f32.partialorder %v9050_v11, 0.0 }
 0x306   : > { %v5035_v42 = vpop.permute.xlu1 %5034 }
 0x307   : > { %v9053_v25 = vadd.f32 %v5035_v42, %v8891_v50 }
 0x309   : > { %v5041_v22 = vpop.permute.xlu0 %5040  ;;  %8054 = vrsqrt.f32 %v9053_v25  ;;  %vm5179_vm6 = vcmp.eq.f32.partialorder %v9053_v25, inf  ;;  %vm5181_vm7 = vcmp.eq.f32.partialorder %v9053_v25, 0.0  ;;  %v5182_v12 = vand.u32 2147483648, %v9053_v25 }
 0x30a   : > { %v5031_v44 = vpop.permute.xlu1 %5030  ;;  %v9058_v26 = vadd.f32 %v5041_v22, %v8895_v56 }
 0x30b   : > { %v9062_v45 = vadd.f32 %v5031_v44, %v8897_v59 }
 0x30c   : > { %8056 = vrsqrt.f32 %v9058_v26  ;;  %vm5200_vm8 = vcmp.eq.f32.partialorder %v9058_v26, inf  ;;  %v5203_v5 = vand.u32 2147483648, %v9058_v26  ;;  %vm5202_vm11 = vcmp.eq.f32.partialorder %v9058_v26, 0.0 }
 0x30d   : > { %v5037_v24 = vpop.permute.xlu0 %5036  ;;  %8058 = vrsqrt.f32 %v9062_v45  ;;  %vm5165_vm9 = vcmp.eq.f32.partialorder %v9062_v45, inf  ;;  %vm5167_vm10 = vcmp.eq.f32.partialorder %v9062_v45, 0.0  ;;  %v5168_v13 = vand.u32 2147483648, %v9062_v45 }
 0x30e   : > { %v5043_v49 = vpop.permute.xlu1 %5042  ;;  %v9069_v50 = vadd.f32 %v5037_v24, %v8903_v61  ;;  %v8051_v57 = vpop.eup %8050 }
 0x30f   : > { %v9065_v52 = vadd.f32 %v5043_v49, %v8905_v62  ;;  %v8053_v62 = vpop.eup %8052  ;;  %v5171_v58 = vmul.f32 %v8051_v57, %v9047_v46 }
 0x310   : > { %v5157_v31 = vmul.f32 %v8053_v62, %v9050_v11  ;;  %vm5186_vm12 = vcmp.eq.f32.partialorder %v9069_v50, inf  ;;  %v5189_v15 = vand.u32 2147483648, %v9069_v50  ;;  %vm5188_vm15 = vcmp.eq.f32.partialorder %v9069_v50, 0.0 }
 0x311   : > { %v5049_v27 = vpop.permute.xlu0 %5048  ;;  %8060 = vrsqrt.f32 %v9065_v52  ;;  %v5173_v34 = vsel %vm5172_vm2, %v9047_v46, %v5171_v58  ;;  %vm5207_vm13 = vcmp.eq.f32.partialorder %v9065_v52, inf  ;;  %vm5209_vm14 = vcmp.eq.f32.partialorder %v9065_v52, 0.0 }
 0x312   : > { %v5039_v48 = vpop.permute.xlu1 %5038  ;;  %v9077_v59 = vadd.f32 %v5049_v27, %v8911_v3  ;;  %8062 = vrsqrt.f32 %v9069_v50  ;;  %v9127_v22 = vsel %vm5174_vm4, %v5175_v30, %v5173_v34 }
 0x313   : > { %v9073_v56 = vadd.f32 %v5039_v48, %v8913_v6  ;;  %v8055_v6 = vpop.eup %8054 }
 0x314   : > { %vm5228_vm1 = vcmp.eq.f32.partialorder %v9077_v59, inf  ;;  %vm5230_vm2 = vcmp.eq.f32.partialorder %v9077_v59, 0.0 }
 0x315   : > { %v5045_v54 = vpop.permute.xlu0 %5044  ;;  %8064 = vrsqrt.f32 %v9073_v56  ;;  %vm5193_vm0 = vcmp.eq.f32.partialorder %v9073_v56, inf }
 0x316   : > { %v5051_v53 = vpop.permute.xlu1 %5050  ;;  %8066 = vrsqrt.f32 %v9077_v59  ;;  %v9083_v61 = vadd.f32 %v5045_v54, %v8919_v8  ;;  %v5161_v8 = vand.u32 2147483648, %v9050_v11  ;;  %v8057_v0 = vpop.eup %8056 }
 0x317   : > { %v9088_v3 = vadd.f32 %v5051_v53, %v8921_v9  ;;  %v5178_v9 = vmul.f32 %v8055_v6, %v9053_v25  ;;  %v8059_v1 = vpop.eup %8058  ;;  %v5199_v17 = vmul.f32 %v8057_v0, %v9058_v26  ;;  %v5210_v53 = vand.u32 2147483648, %v9065_v52 }
 0x318   : > { %8068 = vrsqrt.f32 %v9083_v61  ;;  %v5164_v42 = vmul.f32 %v8059_v1, %v9062_v45  ;;  %vm5214_vm4 = vcmp.eq.f32.partialorder %v9083_v61, inf  ;;  %v5217_v1 = vand.u32 2147483648, %v9083_v61 }
 0x319   : > { %8070 = vrsqrt.f32 %v9088_v3  ;;  %v5180_v44 = vsel %vm5179_vm6, %v9053_v25, %v5178_v9  ;;  %vm5235_vm6 = vcmp.eq.f32.partialorder %v9088_v3, inf }
 0x31a   : > { %v5047_v60 = vpop.permute.xlu1 %5046  ;;  %v9152_v54 = vsel %vm5181_vm7, %v5182_v12, %v5180_v44  ;;  %v5166_v57 = vsel %vm5165_vm9, %v9062_v45, %v5164_v42 }
 0x31b   : > { %v9102_v33 = vadd.f32 %v5047_v60, %v8936_v18  ;;  %v8061_v35 = vpop.eup %8060  ;;  %v5159_v18 = vsel %vm5158_vm3, %v9050_v11, %v5157_v31  ;;  %v5201_v11 = vsel %vm5200_vm8, %v9058_v26, %v5199_v17  ;;  %vm5195_vm3 = vcmp.eq.f32.partialorder %v9073_v56, 0.0 }
 0x31c   : > { %v8063_v21 = vpop.eup %8062  ;;  %v9140_v46 = vsel %vm5160_vm5, %v5161_v8, %v5159_v18  ;;  %v5413_v30 = vpack.c.bf16 %v9152_v54, %v9127_v22  ;;  %v5196_v31 = vand.u32 2147483648, %v9073_v56  ;;  %v5231_v8 = vand.u32 2147483648, %v9077_v59 }
 0x31d   : > { %8072 = vrsqrt.f32 %v9102_v33  ;;  %v5185_v62 = vmul.f32 %v8063_v21, %v9069_v50  ;;  %v9180_v9 = vsel %vm5167_vm10, %v5168_v13, %v5166_v57  ;;  %v9184_v12 = vsel %vm5202_vm11, %v5203_v5, %v5201_v11 }
 0x31e   : > { %vm5216_vm5 = vcmp.eq.f32.partialorder %v9083_v61, 0.0  ;;  %v5412_v17 = vpack.c.bf16 %v9180_v9, %v9140_v46  ;;  %vm5221_vm7 = vcmp.eq.f32.partialorder %v9102_v33, inf  ;;  %vm5237_vm8 = vcmp.eq.f32.partialorder %v9088_v3, 0.0 }
 0x31f   : > { %v8065_v24 = vpop.eup %8064  ;;  %vm5223_vm9 = vcmp.eq.f32.partialorder %v9102_v33, 0.0 }
 0x320   : > { %v8067_v27 = vpop.eup %8066 }
 0x321   : > { %v5065_v7 = vpop.permute.xlu0 %5064  ;;  %v5227_v6 = vmul.f32 %v8067_v27, %v9077_v59 }
 0x322   : > { %v9122_v16 = vadd.f32 %v5065_v7, %v8943_v43  ;;  %v5206_v43 = vmul.f32 %v8061_v35, %v9065_v52  ;;  %v8069_v58 = vpop.eup %8068  ;;  %v5187_v7 = vsel %vm5186_vm12, %v9069_v50, %v5185_v62 }
 0x323   : > { %v5067_v41 = vpop.permute.xlu1 %5066  ;;  %v8071_v34 = vpop.eup %8070  ;;  %v5213_v5 = vmul.f32 %v8069_v58, %v9083_v61  ;;  %v5229_v13 = vsel %vm5228_vm1, %v9077_v59, %v5227_v6 }
 0x324   : > { %v9134_v49 = vadd.f32 %v5067_v41, %v8947_v47  ;;  %v5208_v25 = vsel %vm5207_vm13, %v9065_v52, %v5206_v43  ;;  %v5238_v52 = vand.u32 2147483648, %v9088_v3  ;;  %v9219_v41 = vsel %vm5188_vm15, %v5189_v15, %v5187_v7 }
 0x325   : > { %v5061_v48 = vpop.permute.xlu0 %5060  ;;  %v9196_v45 = vsel %vm5209_vm14, %v5210_v53, %v5208_v25  ;;  %v5234_v44 = vmul.f32 %v8071_v34, %v9088_v3  ;;  %v9233_v50 = vsel %vm5230_vm2, %v5231_v8, %v5229_v13  ;;  %vm5284_vm10 = vcmp.eq.f32.partialorder %v9122_v16, inf }
 0x326   : > { %8074 = vrsqrt.f32 %v9134_v49  ;;  %v9148_v47 = vadd.f32 %v5061_v48, %v8951_v23  ;;  %v5192_v23 = vmul.f32 %v8065_v24, %v9073_v56  ;;  %v5415_v43 = vpack.c.bf16 %v9196_v45, %v9184_v12 }
 0x327   : > { %8076 = vrsqrt.f32 %v9122_v16  ;;  %v8073_v21 = vpop.eup %8072  ;;  %v5215_v27 = vsel %vm5214_vm4, %v9083_v61, %v5213_v5  ;;  %v5287_v11 = vand.u32 2147483648, %v9122_v16  ;;  %vm5291_vm11 = vcmp.eq.f32.partialorder %v9134_v49, inf }
 0x328   : > { %8078 = vrsqrt.f32 %v9148_v47  ;;  %v5220_v57 = vmul.f32 %v8073_v21, %v9102_v33  ;;  %v5236_v25 = vsel %vm5235_vm6, %v9088_v3, %v5234_v44  ;;  %vm5286_vm12 = vcmp.eq.f32.partialorder %v9122_v16, 0.0 }
 0x329   : > { %v5063_v60 = vpop.permute.xlu0 %5062  ;;  %vm5293_vm13 = vcmp.eq.f32.partialorder %v9134_v49, 0.0  ;;  %vm5270_vm14 = vcmp.eq.f32.partialorder %v9148_v47, inf  ;;  %vm5272_vm15 = vcmp.eq.f32.partialorder %v9148_v47, 0.0  ;;  %v5273_v34 = vand.u32 2147483648, %v9148_v47 }
 0x32a   : > { %v9176_v0 = vadd.f32 %v5063_v60, %v8959_v51  ;;  %v5194_v51 = vsel %vm5193_vm0, %v9073_v56, %v5192_v23  ;;  %v5294_v60 = vand.u32 2147483648, %v9134_v49  ;;  %v5222_v61 = vsel %vm5221_vm7, %v9102_v33, %v5220_v57 }
 0x32b   : > { %v5075_v35 = vpop.permute.xlu1 %5074  ;;  %v9223_v42 = vsel %vm5195_vm3, %v5196_v31, %v5194_v51  ;;  %v9262_v31 = vsel %vm5216_vm5, %v5217_v1, %v5215_v27  ;;  %v9277_v1 = vsel %vm5237_vm8, %v5238_v52, %v5236_v25 }
 0x32c   : > { %8080 = vrsqrt.f32 %v9176_v0  ;;  %v9201_v26 = vadd.f32 %v5075_v35, %v8963_v55  ;;  %v5414_v59 = vpack.c.bf16 %v9223_v42, %v9219_v41  ;;  %vm5277_vm0 = vcmp.eq.f32.partialorder %v9176_v0, inf }
 0x32d   : > { %v5073_v18 = vpop.permute.xlu0 %5072  ;;  %vm5279_vm1 = vcmp.eq.f32.partialorder %v9176_v0, 0.0 }
 0x32e   : > { %v9213_v55 = vadd.f32 %v5073_v18, %v8967_v28  ;;  %8082 = vrsqrt.f32 %v9201_v26  ;;  %v5224_v28 = vand.u32 2147483648, %v9102_v33  ;;  %v5280_v18 = vand.u32 2147483648, %v9176_v0 }
 0x32f   : > { %v5071_v24 = vpop.permute.xlu1 %5070  ;;  %vm5319_vm2 = vcmp.eq.f32.partialorder %v9201_v26, inf  ;;  %vm5321_vm5 = vcmp.eq.f32.partialorder %v9201_v26, 0.0 }
 0x330   : > { %v8075_v15 = vpop.eup %8074  ;;  %8084 = vrsqrt.f32 %v9213_v55  ;;  %v9237_v56 = vadd.f32 %v5071_v24, %v8971_v29  ;;  %v9298_v52 = vsel %vm5223_vm9, %v5224_v28, %v5222_v61  ;;  %vm5312_vm3 = vcmp.eq.f32.partialorder %v9213_v55, inf }
 0x331   : > { %v8077_v48 = vpop.eup %8076  ;;  %v5069_v53 = vpop.permute.xlu0 %5068  ;;  %v5290_v23 = vmul.f32 %v8075_v15, %v9134_v49  ;;  %vm5314_vm4 = vcmp.eq.f32.partialorder %v9213_v55, 0.0 }
 0x332   : > { %v8079_v62 = vpop.eup %8078  ;;  %8086 = vrsqrt.f32 %v9237_v56  ;;  %v9250_v29 = vadd.f32 %v5069_v53, %v8977_v63  ;;  %v5283_v35 = vmul.f32 %v8077_v48, %v9122_v16  ;;  %vm5305_vm6 = vcmp.eq.f32.partialorder %v9237_v56, inf }
 0x333   : > { %v5083_v6 = vpop.permute.xlu1 %5082  ;;  %v5269_v58 = vmul.f32 %v8079_v62, %v9148_v47  ;;  %v5292_v51 = vsel %vm5291_vm11, %v9134_v49, %v5290_v23  ;;  %vm5307_vm7 = vcmp.eq.f32.partialorder %v9237_v56, 0.0 }
 0x334   : > { %8088 = vrsqrt.f32 %v9250_v29  ;;  %v9266_v63 = vadd.f32 %v5083_v6, %v8983_v2  ;;  %v5285_v15 = vsel %vm5284_vm10, %v9122_v16, %v5283_v35  ;;  %v5295_v27 = vsel %vm5293_vm13, %v5294_v60, %v5292_v51 }
 0x335   : > { %v5081_v8 = vpop.permute.xlu0 %5080  ;;  %v5271_v13 = vsel %vm5270_vm14, %v9148_v47, %v5269_v58  ;;  %v5288_v47 = vsel %vm5286_vm12, %v5287_v11, %v5285_v15  ;;  %vm5298_vm8 = vcmp.eq.f32.partialorder %v9250_v29, inf  ;;  %vm5300_vm9 = vcmp.eq.f32.partialorder %v9250_v29, 0.0 }
 0x336   : > { %v8081_v7 = vpop.eup %8080  ;;  %v9280_v2 = vadd.f32 %v5081_v8, %v8987_v32  ;;  %8090 = vrsqrt.f32 %v9266_v63  ;;  %v5274_v28 = vsel %vm5272_vm15, %v5273_v34, %v5271_v13  ;;  %v5421_v6 = vpack.c.bf16 %v5295_v27, %v5288_v47 }
 0x337   : > { %v5079_v5 = vpop.permute.xlu1 %5078  ;;  %v5276_v3 = vmul.f32 %v8081_v7, %v9176_v0  ;;  %v5301_v9 = vand.u32 2147483648, %v9250_v29  ;;  %vm5347_vm10 = vcmp.eq.f32.partialorder %v9266_v63, inf }
 0x338   : > { %8092 = vrsqrt.f32 %v9280_v2  ;;  %v9293_v32 = vadd.f32 %v5079_v5, %v8991_v4  ;;  %v8083_v21 = vpop.eup %8082  ;;  %v5322_v4 = vand.u32 2147483648, %v9201_v26  ;;  %vm5340_vm11 = vcmp.eq.f32.partialorder %v9280_v2, inf }
 0x339   : > { %v5077_v44 = vpop.permute.xlu0 %5076  ;;  %v5278_v24 = vsel %vm5277_vm0, %v9176_v0, %v5276_v3  ;;  %v5315_v0 = vand.u32 2147483648, %v9213_v55  ;;  %v5318_v60 = vmul.f32 %v8083_v21, %v9201_v26  ;;  %vm5342_vm12 = vcmp.eq.f32.partialorder %v9280_v2, 0.0 }
 0x33a   : > { %v8085_v48 = vpop.eup %8084  ;;  %8094 = vrsqrt.f32 %v9293_v32  ;;  %v9309_v33 = vadd.f32 %v5077_v44, %v8997_v10  ;;  %v5281_v53 = vsel %vm5279_vm1, %v5280_v18, %v5278_v24  ;;  %v5350_v44 = vand.u32 2147483648, %v9266_v63 }
 0x33b   : > { %v5055_v57 = vpop.permute.xlu1 %5054  ;;  %v5420_v62 = vpack.c.bf16 %v5281_v53, %v5274_v28  ;;  %v5311_v23 = vmul.f32 %v8085_v48, %v9213_v55  ;;  %v5320_v5 = vsel %vm5319_vm2, %v9201_v26, %v5318_v60  ;;  %v5343_v15 = vand.u32 2147483648, %v9280_v2 }
 0x33c   : > { %v8087_v49 = vpop.eup %8086  ;;  %8096 = vrsqrt.f32 %v9309_v33  ;;  %v9321_v10 = vadd.f32 %v5055_v57, %v9003_v20  ;;  %v5308_v20 = vand.u32 2147483648, %v9237_v56  ;;  %v5323_v22 = vsel %vm5321_vm5, %v5322_v4, %v5320_v5 }
 0x33d   : > { %6709 = vmatprep.subr.bf16.mxu1 %v5420_v62  ;;  %v5053_v25 = vpop.permute.xlu0 %5052  ;;  %v5304_v58 = vmul.f32 %v8087_v49, %v9237_v56  ;;  %v5313_v16 = vsel %vm5312_vm3, %v9213_v55, %v5311_v23  ;;  %vm5333_vm13 = vcmp.eq.f32.partialorder %v9293_v32, inf  ;;  %vm5326_vm14 = vcmp.eq.f32.partialorder %v9309_v33, inf }
 0x33e   : > { %v8089_v8 = vpop.eup %8088  ;;  %v9330_v34 = vadd.f32 %v5053_v25, %v9009_v36  ;;  %6710 = vmatpush3.bf16.msra.mxu1 %v5412_v17  ;;  %8098 = vrsqrt.f32 %v9321_v10  ;;  %v5316_v51 = vsel %vm5314_vm4, %v5315_v0, %v5313_v16  ;;  %vm5335_vm15 = vcmp.eq.f32.partialorder %v9293_v32, 0.0 }
 0x33f   : > { %6711 = vmatprep.subr.bf16.mxu1 %v5421_v6  ;;  %v5087_v11 = vpop.permute.xlu1 %5086  ;;  %v5297_v35 = vmul.f32 %v8089_v8, %v9250_v29  ;;  %v5306_v36 = vsel %vm5305_vm6, %v9237_v56, %v5304_v58  ;;  %v5329_v41 = vand.u32 2147483648, %v9309_v33  ;;  %v5336_v42 = vand.u32 2147483648, %v9293_v32 }
 0x340   : > { %8100 = vrsqrt.f32 %v9330_v34  ;;  %v9346_v46 = vadd.f32 %v5087_v11, %v9013_v37  ;;  %v8091_v17 = vpop.eup %8090  ;;  %v5309_v55 = vsel %vm5307_vm7, %v5308_v20, %v5306_v36  ;;  %vm5328_vm0 = vcmp.eq.f32.partialorder %v9309_v33, 0.0 }
 0x341   : > { %v5085_v61 = vpop.permute.xlu0 %5084  ;;  %v5299_v7 = vsel %vm5298_vm8, %v9250_v29, %v5297_v35  ;;  %v5346_v27 = vmul.f32 %v8091_v17, %v9266_v63  ;;  %vm5349_vm1 = vcmp.eq.f32.partialorder %v9266_v63, 0.0  ;;  %v5417_v25 = vpack.c.bf16 %v9277_v1, %v9233_v50 }
 0x342   : > { %v8093_v13 = vpop.eup %8092  ;;  %8102 = vrsqrt.f32 %v9346_v46  ;;  %v9359_v37 = vadd.f32 %v5085_v61, %v9017_v38  ;;  %6712 = vmatpush3.bf16.msra.mxu1 %v5413_v30  ;;  %v5302_v29 = vsel %vm5300_vm9, %v5301_v9, %v5299_v7  ;;  %v5423_v30 = vpack.c.bf16 %v5323_v22, %v5316_v51 }
 0x343   : > { %v5091_v3 = vpop.permute.xlu1 %5090  ;;  %v5422_v18 = vpack.c.bf16 %v5309_v55, %v5302_v29  ;;  %v5339_v21 = vmul.f32 %v8093_v13, %v9280_v2  ;;  %v5348_v49 = vsel %vm5347_vm10, %v9266_v63, %v5346_v27  ;;  %vm5242_vm2 = vcmp.eq.f32.partialorder %v9330_v34, inf }
 0x344   : > { %v8095_v24 = vpop.eup %8094  ;;  %8104 = vrsqrt.f32 %v9359_v37  ;;  %v9371_v38 = vadd.f32 %v5091_v3, %v9021_v39  ;;  %v5351_v12 = vsel %vm5349_vm1, %v5350_v44, %v5348_v49  ;;  %vm5249_vm3 = vcmp.eq.f32.partialorder %v9321_v10, inf  ;;  %v8022_v49 = vld [vmem:[%s9632_s2 + $0x60] ss:$8 sps:$4 sm:$0xff]  }
 0x345   : > { %6713 = vmatprep.subr.bf16.mxu1 %v5422_v18  ;;  %v5089_v54 = vpop.permute.xlu0 %5088  ;;  %v5332_v56 = vmul.f32 %v8095_v24, %v9293_v32  ;;  %v5341_v26 = vsel %vm5340_vm11, %v9280_v2, %v5339_v21  ;;  %vm5361_vm4 = vcmp.eq.f32.partialorder %v9346_v46, inf  ;;  %vm5244_vm5 = vcmp.eq.f32.partialorder %v9330_v34, 0.0 }
 0x346   : > { %v8097_v48 = vpop.eup %8096  ;;  %8106 = vrsqrt.f32 %v9371_v38  ;;  %v9381_v39 = vadd.f32 %v5089_v54, %v9025_v14  ;;  %6714 = vmatpush3.bf16.msra.mxu1 %v5414_v59  ;;  %v5344_v23 = vsel %vm5342_vm12, %v5343_v15, %v5341_v26  ;;  %vm5354_vm6 = vcmp.eq.f32.partialorder %v9359_v37, inf  ;;  %v8005_v26 = vld [vmem:[%s9632_s2 + $0x14] ss:$8 sps:$4 sm:$0xff]  }
 0x347   : > { %6715 = vmatprep.subr.bf16.mxu1 %v5423_v30  ;;  %v5059_v4 = vpop.permute.xlu1 %5058  ;;  %v5325_v28 = vmul.f32 %v8097_v48, %v9309_v33  ;;  %v5334_v53 = vsel %vm5333_vm13, %v9293_v32, %v5332_v56  ;;  %vm5363_vm7 = vcmp.eq.f32.partialorder %v9346_v46, 0.0  ;;  %vm5356_vm8 = vcmp.eq.f32.partialorder %v9359_v37, 0.0 }
 0x348   : > { %8108 = vrsqrt.f32 %v9381_v39  ;;  %v9396_v14 = vadd.f32 %v5059_v4, %v9031_v19  ;;  %v8099_v59 = vpop.eup %8098  ;;  %v5357_v8 = vand.u32 2147483648, %v9359_v37  ;;  %v5364_v20 = vand.u32 2147483648, %v9346_v46  ;;  %v8007_v4 = vld [vmem:[%s9632_s2 + $0x10] ss:$8 sps:$4 sm:$0xff]  }
 0x349   : > { %v5057_v57 = vpop.permute.xlu0 %5056  ;;  %v5327_v62 = vsel %vm5326_vm14, %v9309_v33, %v5325_v28  ;;  %v5337_v33 = vsel %vm5335_vm15, %v5336_v42, %v5334_v53  ;;  %v5248_v45 = vmul.f32 %v8099_v59, %v9321_v10  ;;  %v5252_v35 = vand.u32 2147483648, %v9321_v10  ;;  %v8008_v28 = vld [vmem:[%s9632_s2 + $0x24] ss:$8 sps:$4 sm:$0xff]   ;;  %v8010_v53 = vld [vmem:[%s9632_s2 + $0x20] ss:$8 sps:$4 sm:$0xff]  }
 0x34a   : > { %v8101_v47 = vpop.eup %8100  ;;  %8110 = vrsqrt.f32 %v9396_v14  ;;  %v9409_v19 = vadd.f32 %v5057_v57, %v9037_v40  ;;  %6716 = vmatpush3.bf16.msra.mxu1 %v5415_v43  ;;  %v5330_v0 = vsel %vm5328_vm0, %v5329_v41, %v5327_v62  ;;  %v5416_v40 = vpack.c.bf16 %v9298_v52, %v9262_v31  ;;  %v8013_v41 = vld [vmem:[%s9632_s2 + $0x30] ss:$8 sps:$4 sm:$0xff]   ;;  %v8014_v42 = vld [vmem:[%s9632_s2 + $0x44] ss:$8 sps:$4 sm:$0xff]   ;;  %v8016_v59 = vld [vmem:[%s9632_s2 + $0x40] ss:$8 sps:$4 sm:$0xff]  }
 0x34b   : > { %v5424_v2 = vpack.c.bf16 %v5337_v33, %v5330_v0  ;;  %v5241_v6 = vmul.f32 %v8101_v47, %v9330_v34  ;;  %v5425_v43 = vpack.c.bf16 %v5351_v12, %v5344_v23  ;;  %v5245_v31 = vand.u32 2147483648, %v9330_v34  ;;  %v8017_v57 = vld [vmem:[%s9632_s2 + $0x54] ss:$8 sps:$4 sm:$0xff]   ;;  %v8019_v62 = vld [vmem:[%s9632_s2 + $0x50] ss:$8 sps:$4 sm:$0xff]  }
 0x34c   : > { %v8103_v58 = vpop.eup %8102  ;;  %8112 = vrsqrt.f32 %v9409_v19  ;;  %vm5251_vm9 = vcmp.eq.f32.partialorder %v9321_v10, 0.0  ;;  %vm5375_vm10 = vcmp.eq.f32.partialorder %v9371_v38, inf  ;;  %vm5368_vm11 = vcmp.eq.f32.partialorder %v9381_v39, inf  ;;  %v8020_v23 = vld [vmem:[%s9632_s2 + $0x64] ss:$8 sps:$4 sm:$0xff]  }
 0x34d   : > { %6717 = vmatprep.subr.bf16.mxu1 %v5424_v2  ;;  %v5360_v32 = vmul.f32 %v8103_v58, %v9346_v46  ;;  %v5243_v63 = vsel %vm5242_vm2, %v9330_v34, %v5241_v6  ;;  %v5250_v34 = vsel %vm5249_vm3, %v9321_v10, %v5248_v45  ;;  %v5371_v29 = vand.u32 2147483648, %v9381_v39  ;;  %v8023_v47 = vld [vmem:[%s9632_s2 + $0x74] ss:$8 sps:$4 sm:$0xff]   ;;  %v8026_v0 = vld [vmem:[%s9632_s2 + $0x84] ss:$8 sps:$4 sm:$0xff]  }
 0x34e   : > { %v8105_v50 = vpop.eup %8104  ;;  %6718 = vmatpush3.bf16.msra.mxu1 %v5416_v40  ;;  %v5246_v11 = vsel %vm5244_vm5, %v5245_v31, %v5243_v63  ;;  %v5253_v7 = vsel %vm5251_vm9, %v5252_v35, %v5250_v34  ;;  %v5378_v55 = vand.u32 2147483648, %v9371_v38  ;;  %vm5370_vm12 = vcmp.eq.f32.partialorder %v9381_v39, 0.0  ;;  %v8028_v33 = vld [vmem:[%s9632_s2 + $0x80] ss:$8 sps:$4 sm:$0xff]   ;;  %v8029_v2 = vld [vmem:[%s9632_s2 + $0x94] ss:$8 sps:$4 sm:$0xff]  }
 0x34f   : > { %6719 = vmatprep.subr.bf16.mxu1 %v5425_v43  ;;  %v5353_v1 = vmul.f32 %v8105_v50, %v9359_v37  ;;  %v5362_v52 = vsel %vm5361_vm4, %v9346_v46, %v5360_v32  ;;  %vm5377_vm13 = vcmp.eq.f32.partialorder %v9371_v38, 0.0  ;;  %vm5263_vm14 = vcmp.eq.f32.partialorder %v9396_v14, inf  ;;  %v8032_v6 = vld [vmem:[%s9632_s2 + $0xa4] ss:$8 sps:$4 sm:$0xff]   ;;  %v8034_v58 = vld [vmem:[%s9632_s2 + $0xa0] ss:$8 sps:$4 sm:$0xff]  }
 0x350   : > { %v8107_v60 = vpop.eup %8106  ;;  %v5365_v61 = vsel %vm5363_vm7, %v5364_v20, %v5362_v52  ;;  %vm5256_vm15 = vcmp.eq.f32.partialorder %v9409_v19, inf  ;;  %v5259_v30 = vand.u32 2147483648, %v9409_v19  ;;  %v5266_v56 = vand.u32 2147483648, %v9396_v14  ;;  %v8035_v40 = vld [vmem:[%s9632_s2 + $0xb4] ss:$8 sps:$4 sm:$0xff]  }
 0x351   : > { %v5355_v16 = vsel %vm5354_vm6, %v9359_v37, %v5353_v1  ;;  %v5374_v36 = vmul.f32 %v8107_v60, %v9371_v38  ;;  %v5418_v37 = vpack.c.bf16 %v5253_v7, %v5246_v11  ;;  %vm5258_vm0 = vcmp.eq.f32.partialorder %v9409_v19, 0.0  ;;  %v8037_v12 = vld [vmem:[%s9632_s2 + $0xb0] ss:$8 sps:$4 sm:$0xff]   ;;  %v8038_v45 = vld [vmem:[%s9632_s2 + $0xc4] ss:$8 sps:$4 sm:$0xff]  }
 0x352   : > { %v8109_v9 = vpop.eup %8108  ;;  %6720 = vmatpush3.bf16.msra.mxu1 %v5417_v25  ;;  %v5358_v17 = vsel %vm5356_vm8, %v5357_v8, %v5355_v16  ;;  %vm5265_vm1 = vcmp.eq.f32.partialorder %v9396_v14, 0.0  ;;  %v8031_v25 = vld [vmem:[%s9632_s2 + $0x90] ss:$8 sps:$4 sm:$0xff]   ;;  %v8040_v43 = vld [vmem:[%s9632_s2 + $0xc0] ss:$8 sps:$4 sm:$0xff]   ;;  %vm5781_vm2 = vcmask 130048  }
 0x353   : > { %v5426_v46 = vpack.c.bf16 %v5365_v61, %v5358_v17  ;;  %v5367_v51 = vmul.f32 %v8109_v9, %v9381_v39  ;;  %v5376_v5 = vsel %vm5375_vm10, %v9371_v38, %v5374_v36  ;;  %v8041_v32 = vld [vmem:[%s9632_s2 + $0xd4] ss:$8 sps:$4 sm:$0xff]   ;;  %v8043_v50 = vld [vmem:[%s9632_s2 + $0xd0] ss:$8 sps:$4 sm:$0xff]   ;;  %v8044_v63 = vld [vmem:[%s9632_s2 + $0xe4] ss:$8 sps:$4 sm:$0xff]  }
 0x354   : > { %v8111_v13 = vpop.eup %8110  ;;  %v5379_v44 = vsel %vm5377_vm13, %v5378_v55, %v5376_v5  ;;  %v8046_v31 = vld [vmem:[%s9632_s2 + $0xe0] ss:$8 sps:$4 sm:$0xff]   ;;  %v8047_v1 = vld [vmem:[%s9632_s2 + $0xf4] ss:$8 sps:$4 sm:$0xff]   ;;  %v8049_v52 = vld [vmem:[%s9632_s2 + $0xf0] ss:$8 sps:$4 sm:$0xff]  }
 0x355   : > { %6721 = vmatprep.subr.bf16.mxu1 %v5426_v46  ;;  %v5369_v3 = vsel %vm5368_vm11, %v9381_v39, %v5367_v51  ;;  %v5262_v10 = vmul.f32 %v8111_v13, %v9396_v14  ;;  %v8002_v39 = vld [vmem:[%s9632_s2] ss:$8 sps:$4 sm:$0xff]  }
 0x356   : > { %v8113_v18 = vpop.eup %8112  ;;  %6722 = vmatpush3.bf16.msra.mxu1 %v5418_v37  ;;  %v5372_v21 = vsel %vm5370_vm12, %v5371_v29, %v5369_v3 }
 0x357   : > { %v5427_v24 = vpack.c.bf16 %v5379_v44, %v5372_v21  ;;  %v5255_v22 = vmul.f32 %v8113_v18, %v9409_v19  ;;  %v5264_v54 = vsel %vm5263_vm14, %v9396_v14, %v5262_v10  ;;  %v8011_v14 = vld [vmem:[%s9632_s2 + $0x34] ss:$8 sps:$4 sm:$0xff]  }
 0x358   : > { %v5267_v27 = vsel %vm5265_vm1, %v5266_v56, %v5264_v54 }
 0x359   : > { %6723 = vmatprep.subr.bf16.mxu1 %v5427_v24  ;;  %v5257_v38 = vsel %vm5256_vm15, %v9409_v19, %v5255_v22  ;;  %v8025_v19 = vld [vmem:[%s9632_s2 + $0x70] ss:$8 sps:$4 sm:$0xff]  }
 0x35a   : > { %v5260_v15 = vsel %vm5258_vm0, %v5259_v30, %v5257_v38 }
 0x35b   : > { %v5419_v48 = vpack.c.bf16 %v5267_v27, %v5260_v15 }
 0x35d   : > { %6724 = vmatpush3.bf16.msra.mxu1 %v5419_v48 }
 0x360   : > { %5621 = vmatmul.mubr.bf16.vlgmr.msra.gmra.mrb[32].mxu1 %v8002_v39 }
 0x361   : > { %5628 = vmatprep.mubr.bf16.mxu1 %v8005_v26 }
 0x368   : > { %5629 = vmatmul.mubr.bf16.gmra.mrb[36].mxu1 %v8007_v4 }
 0x369   : > { %5636 = vmatprep.mubr.bf16.mxu1 %v8008_v28 }
 0x370   : > { %5637 = vmatmul.mubr.bf16.gmra.mrb[40].mxu1 %v8010_v53 }
 0x371   : > { %5644 = vmatprep.mubr.bf16.mxu1 %v8011_v14 }
 0x378   : > { %5645 = vmatmul.mubr.bf16.gmra.mrb[44].mxu1 %v8013_v41 }
 0x379   : > { %5652 = vmatprep.mubr.bf16.mxu1 %v8014_v42 }
 0x380   : > { %5653 = vmatmul.mubr.bf16.gmra.mrb[48].mxu1 %v8016_v59 }
 0x381   : > { %5660 = vmatprep.mubr.bf16.mxu1 %v8017_v57 }
 0x388   : > { %5661 = vmatmul.mubr.bf16.gmra.mrb[52].mxu1 %v8019_v62 }
 0x389   : > { %5668 = vmatprep.mubr.bf16.mxu1 %v8020_v23 }
 0x390   : > { %5669 = vmatmul.mubr.bf16.gmra.mrb[56].mxu1 %v8022_v49 }
 0x391   : > { %5676 = vmatprep.mubr.bf16.mxu1 %v8023_v47 }
 0x398   : > { %5677 = vmatmul.mubr.bf16.gmra.mrb[60].mxu1 %v8025_v19 }
 0x399   : > { %5684 = vmatprep.mubr.bf16.mxu1 %v8026_v0 }
 0x3a0   : > { %5685 = vmatmul.mubr.bf16.gmra.mrb[64].mxu1 %v8028_v33 }
 0x3a1   : > { %5692 = vmatprep.mubr.bf16.mxu1 %v8029_v2 }
 0x3a8   : > { %5693 = vmatmul.mubr.bf16.gmra.mrb[68].mxu1 %v8031_v25 }
 0x3a9   : > { %5700 = vmatprep.mubr.bf16.mxu1 %v8032_v6 }
 0x3b0   : > { %5701 = vmatmul.mubr.bf16.gmra.mrb[72].mxu1 %v8034_v58 }
 0x3b1   : > { %5708 = vmatprep.mubr.bf16.mxu1 %v8035_v40 }
 0x3b8   : > { %5709 = vmatmul.mubr.bf16.gmra.mrb[76].mxu1 %v8037_v12 }
 0x3b9   : > { %5716 = vmatprep.mubr.bf16.mxu1 %v8038_v45 }
 0x3c0   : > { %5717 = vmatmul.mubr.bf16.gmra.mrb[80].mxu1 %v8040_v43 }
 0x3c1   : > { %5724 = vmatprep.mubr.bf16.mxu1 %v8041_v32 }
 0x3c8   : > { %5725 = vmatmul.mubr.bf16.gmra.mrb[84].mxu1 %v8043_v50 }
 0x3c9   : > { %5732 = vmatprep.mubr.bf16.mxu1 %v8044_v63 }
 0x3d0   : > { %5733 = vmatmul.mubr.bf16.gmra.mrb[88].mxu1 %v8046_v31 }
 0x3d1   : > { %5740 = vmatprep.mubr.bf16.mxu1 %v8047_v1 }
 0x3d8   : > { %5741 = vmatmul.mubr.bf16.gmra.mrb[92].mxu1 %v8049_v52 }
 0x433   : > { %v6725_v60 = vpop.f32.mrb[32].mxu1 }
 0x434   : > { %v6726_v8 = vpop.f32.mrb[33].mxu1 }
 0x435   : > { %v6727_v20 = vadd.f32 %v6726_v8, %v6725_v60  ;;  %v6728_v34 = vpop.f32.mrb[34].mxu1 }
 0x436   : > { %v6729_v16 = vpop.f32.mrb[35].mxu1 }
 0x437   : > { %v5749_v11 = vmul.f32 0.04, %v6727_v20  ;;  %v6730_v35 = vadd.f32 %v6729_v16, %v6728_v34 }
 0x439   : > { %5782 = vst.msk [vmem:[%s9561_s26] sm:$0xff] %vm5781_vm2, %v5749_v11  ;;  %v5750_v36 = vmul.f32 0.04, %v6730_v35 }
 0x43b   : > { %5783 = vst.msk [vmem:[%s9561_s26 + $0x8] sm:$0xff] %vm5781_vm2, %v5750_v36  ;;  %v6731_v9 = vpop.f32.mrb[36].mxu1 }
 0x43c   : > { %v6732_v17 = vpop.f32.mrb[37].mxu1 }
 0x43d   : > { %v6733_v61 = vadd.f32 %v6732_v17, %v6731_v9  ;;  %v6734_v46 = vpop.f32.mrb[38].mxu1 }
 0x43e   : > { %v6735_v7 = vpop.f32.mrb[39].mxu1 }
 0x43f   : > { %v5751_v51 = vmul.f32 0.04, %v6733_v61  ;;  %v6736_v5 = vadd.f32 %v6735_v7, %v6734_v46 }
 0x441   : > { %5784 = vst.msk [vmem:[%s9561_s26 + $0x10] sm:$0xff] %vm5781_vm2, %v5751_v51  ;;  %v5752_v13 = vmul.f32 0.04, %v6736_v5 }
 0x443   : > { %5785 = vst.msk [vmem:[%s9561_s26 + $0x18] sm:$0xff] %vm5781_vm2, %v5752_v13  ;;  %v6737_v37 = vpop.f32.mrb[40].mxu1 }
 0x444   : > { %v6738_v29 = vpop.f32.mrb[41].mxu1 }
 0x445   : > { %v6739_v55 = vadd.f32 %v6738_v29, %v6737_v37  ;;  %v6740_v3 = vpop.f32.mrb[42].mxu1 }
 0x446   : > { %v6741_v10 = vpop.f32.mrb[43].mxu1 }
 0x447   : > { %v5753_v18 = vmul.f32 0.04, %v6739_v55  ;;  %v6742_v21 = vadd.f32 %v6741_v10, %v6740_v3 }
 0x449   : > { %5786 = vst.msk [vmem:[%s9561_s26 + $0x20] sm:$0xff] %vm5781_vm2, %v5753_v18  ;;  %v5754_v44 = vmul.f32 0.04, %v6742_v21 }
 0x44b   : > { %5787 = vst.msk [vmem:[%s9561_s26 + $0x28] sm:$0xff] %vm5781_vm2, %v5754_v44  ;;  %v6743_v24 = vpop.f32.mrb[44].mxu1 }
 0x44c   : > { %v6744_v22 = vpop.f32.mrb[45].mxu1 }
 0x44d   : > { %v6745_v54 = vadd.f32 %v6744_v22, %v6743_v24  ;;  %v6746_v30 = vpop.f32.mrb[46].mxu1 }
 0x44e   : > { %v6747_v56 = vpop.f32.mrb[47].mxu1 }
 0x44f   : > { %v5755_v38 = vmul.f32 0.04, %v6745_v54  ;;  %v6748_v15 = vadd.f32 %v6747_v56, %v6746_v30 }
 0x451   : > { %5788 = vst.msk [vmem:[%s9561_s26 + $0x30] sm:$0xff] %vm5781_vm2, %v5755_v38  ;;  %v5756_v27 = vmul.f32 0.04, %v6748_v15 }
 0x453   : > { %5789 = vst.msk [vmem:[%s9561_s26 + $0x38] sm:$0xff] %vm5781_vm2, %v5756_v27  ;;  %v6749_v48 = vpop.f32.mrb[48].mxu1 }
 0x454   : > { %v6750_v39 = vpop.f32.mrb[49].mxu1 }
 0x455   : > { %v6751_v26 = vadd.f32 %v6750_v39, %v6749_v48  ;;  %v6752_v4 = vpop.f32.mrb[50].mxu1 }
 0x456   : > { %v6753_v28 = vpop.f32.mrb[51].mxu1 }
 0x457   : > { %v5757_v53 = vmul.f32 0.04, %v6751_v26  ;;  %v6754_v14 = vadd.f32 %v6753_v28, %v6752_v4 }
 0x459   : > { %5790 = vst.msk [vmem:[%s9561_s26 + $0x40] sm:$0xff] %vm5781_vm2, %v5757_v53  ;;  %v5758_v41 = vmul.f32 0.04, %v6754_v14 }
 0x45b   : > { %5791 = vst.msk [vmem:[%s9561_s26 + $0x48] sm:$0xff] %vm5781_vm2, %v5758_v41  ;;  %v6755_v42 = vpop.f32.mrb[52].mxu1 }
 0x45c   : > { %v6756_v59 = vpop.f32.mrb[53].mxu1 }
 0x45d   : > { %v6757_v57 = vadd.f32 %v6756_v59, %v6755_v42  ;;  %v6758_v62 = vpop.f32.mrb[54].mxu1 }
 0x45e   : > { %v6759_v23 = vpop.f32.mrb[55].mxu1 }
 0x45f   : > { %v5759_v49 = vmul.f32 0.04, %v6757_v57  ;;  %v6760_v47 = vadd.f32 %v6759_v23, %v6758_v62 }
 0x461   : > { %5792 = vst.msk [vmem:[%s9561_s26 + $0x50] sm:$0xff] %vm5781_vm2, %v5759_v49  ;;  %v5760_v19 = vmul.f32 0.04, %v6760_v47 }
 0x463   : > { %5793 = vst.msk [vmem:[%s9561_s26 + $0x58] sm:$0xff] %vm5781_vm2, %v5760_v19  ;;  %v6761_v0 = vpop.f32.mrb[56].mxu1 }
 0x464   : > { %v6762_v33 = vpop.f32.mrb[57].mxu1 }
 0x465   : > { %v6763_v2 = vadd.f32 %v6762_v33, %v6761_v0  ;;  %v6764_v25 = vpop.f32.mrb[58].mxu1 }
 0x466   : > { %v6765_v6 = vpop.f32.mrb[59].mxu1 }
 0x467   : > { %v5761_v58 = vmul.f32 0.04, %v6763_v2  ;;  %v6766_v40 = vadd.f32 %v6765_v6, %v6764_v25 }
 0x469   : > { %5794 = vst.msk [vmem:[%s9561_s26 + $0x60] sm:$0xff] %vm5781_vm2, %v5761_v58  ;;  %v5762_v12 = vmul.f32 0.04, %v6766_v40 }
 0x46b   : > { %5795 = vst.msk [vmem:[%s9561_s26 + $0x68] sm:$0xff] %vm5781_vm2, %v5762_v12  ;;  %v6767_v45 = vpop.f32.mrb[60].mxu1 }
 0x46c   : > { %v6768_v43 = vpop.f32.mrb[61].mxu1 }
 0x46d   : > { %v6769_v32 = vadd.f32 %v6768_v43, %v6767_v45  ;;  %v6770_v50 = vpop.f32.mrb[62].mxu1 }
 0x46e   : > { %v6771_v63 = vpop.f32.mrb[63].mxu1 }
 0x46f   : > { %v5763_v31 = vmul.f32 0.04, %v6769_v32  ;;  %v6772_v1 = vadd.f32 %v6771_v63, %v6770_v50 }
 0x471   : > { %5796 = vst.msk [vmem:[%s9561_s26 + $0x70] sm:$0xff] %vm5781_vm2, %v5763_v31  ;;  %v5764_v52 = vmul.f32 0.04, %v6772_v1 }
 0x473   : > { %5797 = vst.msk [vmem:[%s9561_s26 + $0x78] sm:$0xff] %vm5781_vm2, %v5764_v52  ;;  %v6773_v60 = vpop.f32.mrb[64].mxu1 }
 0x474   : > { %v6774_v8 = vpop.f32.mrb[65].mxu1 }
 0x475   : > { %v6775_v20 = vadd.f32 %v6774_v8, %v6773_v60  ;;  %v6776_v34 = vpop.f32.mrb[66].mxu1 }
 0x476   : > { %v6777_v16 = vpop.f32.mrb[67].mxu1 }
 0x477   : > { %v5765_v11 = vmul.f32 0.04, %v6775_v20  ;;  %v6778_v35 = vadd.f32 %v6777_v16, %v6776_v34 }
 0x479   : > { %5798 = vst.msk [vmem:[%s9561_s26 + $0x80] sm:$0xff] %vm5781_vm2, %v5765_v11  ;;  %v5766_v36 = vmul.f32 0.04, %v6778_v35 }
 0x47b   : > { %5799 = vst.msk [vmem:[%s9561_s26 + $0x88] sm:$0xff] %vm5781_vm2, %v5766_v36  ;;  %v6779_v9 = vpop.f32.mrb[68].mxu1 }
 0x47c   : > { %v6780_v17 = vpop.f32.mrb[69].mxu1 }
 0x47d   : > { %v6781_v61 = vadd.f32 %v6780_v17, %v6779_v9  ;;  %v6782_v46 = vpop.f32.mrb[70].mxu1 }
 0x47e   : > { %v6783_v7 = vpop.f32.mrb[71].mxu1 }
 0x47f   : > { %v5767_v51 = vmul.f32 0.04, %v6781_v61  ;;  %v6784_v5 = vadd.f32 %v6783_v7, %v6782_v46 }
 0x481   : > { %5800 = vst.msk [vmem:[%s9561_s26 + $0x90] sm:$0xff] %vm5781_vm2, %v5767_v51  ;;  %v5768_v13 = vmul.f32 0.04, %v6784_v5 }
 0x483   : > { %5801 = vst.msk [vmem:[%s9561_s26 + $0x98] sm:$0xff] %vm5781_vm2, %v5768_v13  ;;  %v6785_v37 = vpop.f32.mrb[72].mxu1 }
 0x484   : > { %v6786_v29 = vpop.f32.mrb[73].mxu1 }
 0x485   : > { %v6787_v55 = vadd.f32 %v6786_v29, %v6785_v37  ;;  %v6788_v3 = vpop.f32.mrb[74].mxu1 }
 0x486   : > { %v6789_v10 = vpop.f32.mrb[75].mxu1 }
 0x487   : > { %v5769_v18 = vmul.f32 0.04, %v6787_v55  ;;  %v6790_v21 = vadd.f32 %v6789_v10, %v6788_v3 }
 0x489   : > { %5802 = vst.msk [vmem:[%s9561_s26 + $0xa0] sm:$0xff] %vm5781_vm2, %v5769_v18  ;;  %v5770_v44 = vmul.f32 0.04, %v6790_v21 }
 0x48b   : > { %5803 = vst.msk [vmem:[%s9561_s26 + $0xa8] sm:$0xff] %vm5781_vm2, %v5770_v44  ;;  %v6791_v24 = vpop.f32.mrb[76].mxu1 }
 0x48c   : > { %v6792_v22 = vpop.f32.mrb[77].mxu1 }
 0x48d   : > { %v6793_v54 = vadd.f32 %v6792_v22, %v6791_v24  ;;  %v6794_v30 = vpop.f32.mrb[78].mxu1 }
 0x48e   : > { %v6795_v56 = vpop.f32.mrb[79].mxu1 }
 0x48f   : > { %v5771_v38 = vmul.f32 0.04, %v6793_v54  ;;  %v6796_v15 = vadd.f32 %v6795_v56, %v6794_v30 }
 0x491   : > { %5804 = vst.msk [vmem:[%s9561_s26 + $0xb0] sm:$0xff] %vm5781_vm2, %v5771_v38  ;;  %v5772_v27 = vmul.f32 0.04, %v6796_v15 }
 0x493   : > { %5805 = vst.msk [vmem:[%s9561_s26 + $0xb8] sm:$0xff] %vm5781_vm2, %v5772_v27  ;;  %v6797_v48 = vpop.f32.mrb[80].mxu1 }
 0x494   : > { %v6798_v39 = vpop.f32.mrb[81].mxu1 }
 0x495   : > { %v6799_v26 = vadd.f32 %v6798_v39, %v6797_v48  ;;  %v6800_v4 = vpop.f32.mrb[82].mxu1 }
 0x496   : > { %v6801_v28 = vpop.f32.mrb[83].mxu1 }
 0x497   : > { %v5773_v53 = vmul.f32 0.04, %v6799_v26  ;;  %v6802_v14 = vadd.f32 %v6801_v28, %v6800_v4 }
 0x499   : > { %5806 = vst.msk [vmem:[%s9561_s26 + $0xc0] sm:$0xff] %vm5781_vm2, %v5773_v53  ;;  %v5774_v41 = vmul.f32 0.04, %v6802_v14 }
 0x49b   : > { %5807 = vst.msk [vmem:[%s9561_s26 + $0xc8] sm:$0xff] %vm5781_vm2, %v5774_v41  ;;  %v6803_v42 = vpop.f32.mrb[84].mxu1 }
 0x49c   : > { %v6804_v59 = vpop.f32.mrb[85].mxu1 }
 0x49d   : > { %v6805_v57 = vadd.f32 %v6804_v59, %v6803_v42  ;;  %v6806_v62 = vpop.f32.mrb[86].mxu1 }
 0x49e   : > { %v6807_v23 = vpop.f32.mrb[87].mxu1 }
 0x49f   : > { %v5775_v49 = vmul.f32 0.04, %v6805_v57  ;;  %v6808_v47 = vadd.f32 %v6807_v23, %v6806_v62 }
 0x4a1   : > { %5808 = vst.msk [vmem:[%s9561_s26 + $0xd0] sm:$0xff] %vm5781_vm2, %v5775_v49  ;;  %v5776_v19 = vmul.f32 0.04, %v6808_v47 }
 0x4a3   : > { %5809 = vst.msk [vmem:[%s9561_s26 + $0xd8] sm:$0xff] %vm5781_vm2, %v5776_v19  ;;  %v6809_v0 = vpop.f32.mrb[88].mxu1 }
 0x4a4   : > { %v6810_v33 = vpop.f32.mrb[89].mxu1 }
 0x4a5   : > { %v6811_v2 = vadd.f32 %v6810_v33, %v6809_v0  ;;  %v6812_v25 = vpop.f32.mrb[90].mxu1 }
 0x4a6   : > { %v6813_v6 = vpop.f32.mrb[91].mxu1 }
 0x4a7   : > { %v5777_v58 = vmul.f32 0.04, %v6811_v2  ;;  %v6814_v40 = vadd.f32 %v6813_v6, %v6812_v25 }
 0x4a9   : > { %5810 = vst.msk [vmem:[%s9561_s26 + $0xe0] sm:$0xff] %vm5781_vm2, %v5777_v58  ;;  %v5778_v12 = vmul.f32 0.04, %v6814_v40 }
 0x4ab   : > { %5811 = vst.msk [vmem:[%s9561_s26 + $0xe8] sm:$0xff] %vm5781_vm2, %v5778_v12  ;;  %v6815_v45 = vpop.f32.mrb[92].mxu1 }
 0x4ac   : > { %v6816_v43 = vpop.f32.mrb[93].mxu1 }
 0x4ad   : > { %v6817_v32 = vadd.f32 %v6816_v43, %v6815_v45  ;;  %v6818_v50 = vpop.f32.mrb[94].mxu1 }
 0x4ae   : > { %v6819_v63 = vpop.f32.mrb[95].mxu1 }
 0x4af   : > { %v5779_v31 = vmul.f32 0.04, %v6817_v32  ;;  %v6820_v1 = vadd.f32 %v6819_v63, %v6818_v50 }
 0x4b1   : > { %5812 = vst.msk [vmem:[%s9561_s26 + $0xf0] sm:$0xff] %vm5781_vm2, %v5779_v31  ;;  %v5780_v52 = vmul.f32 0.04, %v6820_v1 }
 0x4b3   : > { %5813 = vst.msk [vmem:[%s9561_s26 + $0xf8] sm:$0xff] %vm5781_vm2, %v5780_v52 }
 0x4b4 PF: > { %s13_s12 = sadd.s32 1, %s8124_s12  }
 0x4b5   : > { %p10_p4 = scmp.ge.s32.totalorder %s13_s12, 4  }
 0x4b7   :  { %12 = sbr.rel (!%p10_p4) target bundleno = 1 (0x1), region = 74 }

</bundles_post_ra>
